<compile_context>
chip_gen: v5e
topology: v5e:2x2
jax: 0.10.0
libtpu: 0.0.40
codegen_flags: <defaults>
</compile_context>

<pallas_src>
import jax
import jax.numpy as jnp
from jax import lax
from jax.experimental import pallas as pl
from jax.experimental.pallas import tpu as pltpu


# ------------------ Kernel 1: lepe_linear + depthwise 3x3 ------------------ #
def _lepe_kernel(x_ref, wl_ref, bl_ref, dww_ref, dwb_ref, o_ref):
    # x_ref  : (H*W, C_in)  tokens
    # wl_ref : (C_in, TC)   lepe_linear weight column tile (stored (in, out))
    # bl_ref : (1, TC)      lepe_linear bias tile
    # dww_ref: (9, TC)      depthwise 3x3 taps, row-major t = ky * 3 + kx
    # dwb_ref: (1, TC)      conv bias tile
    # o_ref  : (H, W, TC)   depthwise-conv output, NHWC values
    H, W, TC = o_ref.shape

    lin = jnp.dot(x_ref[...], wl_ref[...], preferred_element_type=jnp.float32)
    lin = lin + bl_ref[...].astype(jnp.float32)
    h = lin.reshape(H, W, TC)

    # zero halo built in VMEM/registers (no padded copy ever touches HBM)
    zrow = jnp.zeros((1, W, TC), jnp.float32)
    hp = jnp.concatenate([zrow, h, zrow], axis=0)            # (H+2, W,   TC)
    zcol = jnp.zeros((H + 2, 1, TC), jnp.float32)
    hp = jnp.concatenate([zcol, hp, zcol], axis=1)           # (H+2, W+2, TC)

    acc = jnp.zeros((H, W, TC), jnp.float32)
    for ky in range(3):
        for kx in range(3):
            acc = acc + hp[ky:ky + H, kx:kx + W, :] * dww_ref[ky * 3 + kx, :]
    acc = acc + dwb_ref[...].astype(jnp.float32)
    o_ref[...] = acc.astype(o_ref.dtype)


def lepe_linear_dwconv(x2d, wl, bl, dww, dwb, H, W, *, tc=None):
    HW, c_in = x2d.shape
    C = wl.shape[1]
    if tc is None:
        tc = min(C, 128)
    assert C % tc == 0
    return pl.pallas_call(
        _lepe_kernel,
        out_shape=jax.ShapeDtypeStruct((H, W, C), x2d.dtype),
        grid_spec=pltpu.PrefetchScalarGridSpec(
            num_scalar_prefetch=0,
            grid=(C // tc,),
            in_specs=[
                pl.BlockSpec((HW, c_in), lambda j: (0, 0)),
                pl.BlockSpec((c_in, tc), lambda j: (0, j)),
                pl.BlockSpec((1, tc), lambda j: (0, j)),
                pl.BlockSpec((9, tc), lambda j: (0, j)),
                pl.BlockSpec((1, tc), lambda j: (0, j)),
            ],
            out_specs=pl.BlockSpec((H, W, tc), lambda j: (0, 0, j)),
        ),
        compiler_params=pltpu.CompilerParams(dimension_semantics=("parallel",)),
    )(x2d, wl, bl.reshape(1, C), dww, dwb.reshape(1, C))


# ------ Kernel 2: q/kv proj + per-row multi-head attention + lepe + proj --- #
def _make_attn_kernel(num_heads, head_dim, scale):
    def kernel(x_ref, lepe_ref, wq_ref, wkv_ref, wp_ref, bp_ref, o_ref):
        TH, W, C = o_ref.shape
        n = TH * W
        x2 = x_ref[...].reshape(n, C)

        q = jnp.dot(x2, wq_ref[...], preferred_element_type=jnp.float32)    # (n, C)
        kv = jnp.dot(x2, wkv_ref[...], preferred_element_type=jnp.float32)  # (n, 2C)

        # tokens attend only within their own image row -> block-diagonal mask
        ri = lax.broadcasted_iota(jnp.int32, (n, n), 0) // W
        rj = lax.broadcasted_iota(jnp.int32, (n, n), 1) // W
        same_row = ri == rj
        neg = jnp.float32(-1e30)

        head_outs = []
        for hi in range(num_heads):
            lo = hi * head_dim
            qh = q[:, lo:lo + head_dim]                       # (n, hd)
            kh = kv[:, lo:lo + head_dim]                      # (n, hd)
            vh = kv[:, C + lo:C + lo + head_dim]              # (n, hd)
            s = jnp.dot(qh, kh.T, preferred_element_type=jnp.float32) * scale
            s = jnp.where(same_row, s, neg)
            s = s - jnp.max(s, axis=-1, keepdims=True)
            e = jnp.exp(s)
            p = e / jnp.sum(e, axis=-1, keepdims=True)
            head_outs.append(jnp.dot(p, vh, preferred_element_type=jnp.float32))
        attn_out = jnp.concatenate(head_outs, axis=-1)        # (n, C)

        y = attn_out + lepe_ref[...].astype(jnp.float32).reshape(n, C)
        out = jnp.dot(y, wp_ref[...], preferred_element_type=jnp.float32)
        out = out + bp_ref[...].astype(jnp.float32)
        o_ref[...] = out.reshape(TH, W, C).astype(o_ref.dtype)

    return kernel


def fused_row_attention(x_hwc, lepe_hwc, wq, wkv, wp, bp, *, num_heads, scale,
                        th=None):
    H, W, C = x_hwc.shape
    assert C % num_heads == 0
    head_dim = C // num_heads
    if th is None:
        th = next(t for t in (8, 4, 2, 1) if H % t == 0)
    kernel = _make_attn_kernel(num_heads, head_dim, scale)
    return pl.pallas_call(
        kernel,
        out_shape=jax.ShapeDtypeStruct((H, W, C), x_hwc.dtype),
        grid_spec=pltpu.PrefetchScalarGridSpec(
            num_scalar_prefetch=0,
            grid=(H // th,),
            in_specs=[
                pl.BlockSpec((th, W, C), lambda i: (i, 0, 0)),
                pl.BlockSpec((th, W, C), lambda i: (i, 0, 0)),
                pl.BlockSpec((C, C), lambda i: (0, 0)),
                pl.BlockSpec((C, 2 * C), lambda i: (0, 0)),
                pl.BlockSpec((C, C), lambda i: (0, 0)),
                pl.BlockSpec((1, C), lambda i: (0, 0)),
            ],
            out_specs=pl.BlockSpec((th, W, C), lambda i: (i, 0, 0)),
        ),
        compiler_params=pltpu.CompilerParams(dimension_semantics=("parallel",)),
    )(x_hwc, lepe_hwc, wq, wkv, wp, bp.reshape(1, C))


# ------------------------------ forward pass ------------------------------- #
def attention_forward(x_nchw, H, W, params, *, num_heads):
    B, C = x_nchw.shape[0], x_nchw.shape[1]
    assert B == 1, "the module's own reshapes require batch == 1"
    head_dim = C // num_heads
    scale = float(head_dim) ** -0.5

    # x.flatten(2).transpose(1, 2) -> tokens (1, H*W, C)
    tokens = jnp.transpose(x_nchw.reshape(B, C, H * W), (0, 2, 1))
    x2d = tokens.reshape(H * W, C)
    x_hwc = x2d.reshape(H, W, C)

    # lepe = lepe_conv(lepe_linear(tokens) as NCHW).view(H, C, W).transpose(-1, -2)
    conv_nhwc = lepe_linear_dwconv(
        x2d, params["lepe_lin_w"], params["lepe_lin_b"],
        params["lepe_conv_w"], params["lepe_conv_b"], H, W)
    conv_chw = jnp.transpose(conv_nhwc, (2, 0, 1))               # NCHW values (B=1)
    lepe = jnp.swapaxes(conv_chw.reshape(H, C, W), -1, -2)       # (H, W, C)

    out_hwc = fused_row_attention(
        x_hwc, lepe, params["q_w"], params["kv_w"],
        params["proj_w"], params["proj_b"], num_heads=num_heads, scale=scale)

    # x.permute(2, 0, 1).reshape(B, H, W, C)
    out = jnp.reshape(jnp.transpose(out_hwc, (2, 0, 1)), (B, H, W, C))
    return out, None      # mask is None on the sr_ratio == 1 path


# ------------------------------ pure-JAX ref ------------------------------- #
def attention_reference(x_nchw, H, W, params, *, num_heads):
    B, C = x_nchw.shape[0], x_nchw.shape[1]
    head_dim = C // num_heads
    scale = float(head_dim) ** -0.5
    tokens = jnp.transpose(x_nchw.reshape(B, C, H * W), (0, 2, 1))   # (1, HW, C)

    # lepe path
    lin = tokens.reshape(H * W, C) @ params["lepe_lin_w"] + params["lepe_lin_b"]
    lin_nchw = jnp.transpose(lin.reshape(1, H * W, C), (0, 2, 1)).reshape(1, C, H, W)
    xp = jnp.pad(lin_nchw, ((0, 0), (0, 0), (1, 1), (1, 1)))
    conv = jnp.zeros_like(lin_nchw)
    for ky in range(3):
        for kx in range(3):
            conv = conv + xp[:, :, ky:ky + H, kx:kx + W] * \
                params["lepe_conv_w"][ky * 3 + kx][None, :, None, None]
    conv = conv + params["lepe_conv_b"][None, :, None, None]
    lepe = jnp.swapaxes(conv.reshape(H, C, W), -1, -2)               # (H, W, C)

    # per-row multi-head attention (sr_ratio == 1 path)
    xh = tokens.reshape(H, W, C)
    q = (xh @ params["q_w"]).reshape(H, W, num_heads, head_dim).transpose(0, 2, 1, 3)
    kv = (xh @ params["kv_w"]).reshape(H, W, 2, num_heads, head_dim) \
        .transpose(2, 0, 3, 1, 4)
    k, v = kv[0], kv[1]
    attn = jnp.einsum("bhqd,bhkd->bhqk", q, k) * scale
    attn = jax.nn.softmax(attn, axis=-1)
    o = jnp.einsum("bhqk,bhkd->bhqd", attn, v).transpose(0, 2, 1, 3).reshape(H, W, C)
    o = (o + lepe) @ params["proj_w"] + params["proj_b"]
    return jnp.reshape(jnp.transpose(o, (2, 0, 1)), (B, H, W, C))


if __name__ == "__main__":
    B, C, H, W = 1, 128, 16, 16        # dim=128, num_heads=8 -> head_dim=16
    num_heads = 8

    key = jax.random.PRNGKey(0)
    ks = jax.random.split(key, 9)

    params = {
        # nn.Linear weights stored transposed: (in_features, out_features)
        "lepe_lin_w": jax.random.normal(ks[0], (C, C), jnp.float32) * 0.02,
        "lepe_lin_b": jax.random.normal(ks[1], (C,), jnp.float32) * 0.1,
        # depthwise Conv2d(C, C, 3, padding=1, groups=C): taps (9, C), t = ky*3+kx
        "lepe_conv_w": jax.random.normal(ks[2], (9, C), jnp.float32) * (2.0 / 9.0) ** 0.5,
        "lepe_conv_b": jax.random.normal(ks[3], (C,), jnp.float32) * 0.1,
        "q_w": jax.random.normal(ks[4], (C, C), jnp.float32) * 0.02,     # qkv_bias=False
        "kv_w": jax.random.normal(ks[5], (C, 2 * C), jnp.float32) * 0.02,
        "proj_w": jax.random.normal(ks[6], (C, C), jnp.float32) * 0.02,
        "proj_b": jax.random.normal(ks[7], (C,), jnp.float32) * 0.1,
    }

    x = jax.random.normal(ks[8], (B, C, H, W), jnp.float32)

    out, mask = attention_forward(x, H, W, params, num_heads=num_heads)
    out = jax.block_until_ready(out)

    ref = attention_reference(x, H, W, params, num_heads=num_heads)
    assert out.shape == (B, H, W, C)
    assert mask is None
    err = float(jnp.max(jnp.abs(out - ref)))
    assert err < 5e-3, f"max abs error {err}"

    print("KERNEL_OK")
</pallas_src>

<mosaic_0001>
module attributes {stable_mosaic.version = 11 : i64} {
  func.func @_lepe_kernel(%arg0: i32, %arg1: memref<256x128xf32, #tpu.memory_space<vmem>>, %arg2: memref<128x128xf32, #tpu.memory_space<vmem>>, %arg3: memref<1x128xf32, #tpu.memory_space<vmem>>, %arg4: memref<9x128xf32, #tpu.memory_space<vmem>>, %arg5: memref<1x128xf32, #tpu.memory_space<vmem>>, %arg6: memref<16x16x128xf32, #tpu.memory_space<vmem>>) attributes {dimension_semantics = [#tpu.dimension_semantics<parallel>], iteration_bounds = array<i64: 1>, scalar_prefetch = 0 : i64, scratch_operands = 0 : i64, tpu.core_type = #tpu.core_type<tc>, window_params = [{pipeline_mode = #tpu.pipeline_mode<synchronous>, transform_indices = @transform_0, window_bounds = array<i64: 256, 128>}, {transform_indices = @transform_1, window_bounds = array<i64: 128, 128>}, {transform_indices = @transform_2, window_bounds = array<i64: 1, 128>}, {transform_indices = @transform_3, window_bounds = array<i64: 9, 128>}, {transform_indices = @transform_4, window_bounds = array<i64: 1, 128>}, {transform_indices = @transform_5, window_bounds = array<i64: 16, 16, 128>}]} {
    %c0 = arith.constant 0 : index
    %c0_0 = arith.constant 0 : index
    %0 = vector.load %arg1[%c0, %c0_0] : memref<256x128xf32, #tpu.memory_space<vmem>>, vector<256x128xf32>
    %c0_1 = arith.constant 0 : index
    %c0_2 = arith.constant 0 : index
    %1 = vector.load %arg2[%c0_1, %c0_2] : memref<128x128xf32, #tpu.memory_space<vmem>>, vector<128x128xf32>
    %cst = arith.constant dense<0.000000e+00> : vector<256x128xf32>
    %2 = tpu.matmul %0, %1, %cst {dimension_numbers = #tpu.dot_dimension_numbers<[1], [0], [0], [1], [0, 0, 1, 1], [], []>} : vector<256x128xf32>, vector<128x128xf32>, vector<256x128xf32> -> vector<256x128xf32>
    %c0_3 = arith.constant 0 : index
    %c0_4 = arith.constant 0 : index
    %3 = vector.load %arg3[%c0_3, %c0_4] : memref<1x128xf32, #tpu.memory_space<vmem>>, vector<1x128xf32>
    %4 = vector.broadcast %3 : vector<1x128xf32> to vector<256x128xf32>
    %5 = arith.addf %2, %4 : vector<256x128xf32>
    %6 = vector.shape_cast %5 : vector<256x128xf32> to vector<16x16x128xf32>
    %cst_5 = arith.constant 0.000000e+00 : f32
    %7 = vector.broadcast %cst_5 : f32 to vector<1x16x128xf32>
    %8 = tpu.concatenate %7, %6, %7 in 0 : vector<1x16x128xf32>, vector<16x16x128xf32>, vector<1x16x128xf32> -> vector<18x16x128xf32>
    %cst_6 = arith.constant 0.000000e+00 : f32
    %9 = vector.broadcast %cst_6 : f32 to vector<18x1x128xf32>
    %10 = tpu.concatenate %9, %8, %9 in 1 : vector<18x1x128xf32>, vector<18x16x128xf32>, vector<18x1x128xf32> -> vector<18x18x128xf32>
    %cst_7 = arith.constant 0.000000e+00 : f32
    %11 = vector.broadcast %cst_7 : f32 to vector<16x16x128xf32>
    %12 = vector.extract_strided_slice %10 {offsets = [0, 0, 0], sizes = [16, 16, 128], strides = [1, 1, 1]} : vector<18x18x128xf32> to vector<16x16x128xf32>
    %c0_8 = arith.constant 0 : index
    %c0_9 = arith.constant 0 : index
    %13 = vector.load %arg4[%c0_8, %c0_9] : memref<9x128xf32, #tpu.memory_space<vmem>>, vector<1x128xf32>
    %14 = vector.shape_cast %13 : vector<1x128xf32> to vector<128xf32>
    %15 = vector.shape_cast %14 : vector<128xf32> to vector<1x1x128xf32>
    %16 = vector.broadcast %15 : vector<1x1x128xf32> to vector<16x16x128xf32>
    %17 = arith.mulf %12, %16 : vector<16x16x128xf32>
    %18 = arith.addf %11, %17 : vector<16x16x128xf32>
    %19 = vector.extract_strided_slice %10 {offsets = [0, 1, 0], sizes = [16, 16, 128], strides = [1, 1, 1]} : vector<18x18x128xf32> to vector<16x16x128xf32>
    %c1 = arith.constant 1 : index
    %c0_10 = arith.constant 0 : index
    %20 = vector.load %arg4[%c1, %c0_10] : memref<9x128xf32, #tpu.memory_space<vmem>>, vector<1x128xf32>
    %21 = vector.shape_cast %20 : vector<1x128xf32> to vector<128xf32>
    %22 = vector.shape_cast %21 : vector<128xf32> to vector<1x1x128xf32>
    %23 = vector.broadcast %22 : vector<1x1x128xf32> to vector<16x16x128xf32>
    %24 = arith.mulf %19, %23 : vector<16x16x128xf32>
    %25 = arith.addf %18, %24 : vector<16x16x128xf32>
    %26 = vector.extract_strided_slice %10 {offsets = [0, 2, 0], sizes = [16, 16, 128], strides = [1, 1, 1]} : vector<18x18x128xf32> to vector<16x16x128xf32>
    %c2 = arith.constant 2 : index
    %c0_11 = arith.constant 0 : index
    %27 = vector.load %arg4[%c2, %c0_11] : memref<9x128xf32, #tpu.memory_space<vmem>>, vector<1x128xf32>
    %28 = vector.shape_cast %27 : vector<1x128xf32> to vector<128xf32>
    %29 = vector.shape_cast %28 : vector<128xf32> to vector<1x1x128xf32>
    %30 = vector.broadcast %29 : vector<1x1x128xf32> to vector<16x16x128xf32>
    %31 = arith.mulf %26, %30 : vector<16x16x128xf32>
    %32 = arith.addf %25, %31 : vector<16x16x128xf32>
    %33 = vector.extract_strided_slice %10 {offsets = [1, 0, 0], sizes = [16, 16, 128], strides = [1, 1, 1]} : vector<18x18x128xf32> to vector<16x16x128xf32>
    %c3 = arith.constant 3 : index
    %c0_12 = arith.constant 0 : index
    %34 = vector.load %arg4[%c3, %c0_12] : memref<9x128xf32, #tpu.memory_space<vmem>>, vector<1x128xf32>
    %35 = vector.shape_cast %34 : vector<1x128xf32> to vector<128xf32>
    %36 = vector.shape_cast %35 : vector<128xf32> to vector<1x1x128xf32>
    %37 = vector.broadcast %36 : vector<1x1x128xf32> to vector<16x16x128xf32>
    %38 = arith.mulf %33, %37 : vector<16x16x128xf32>
    %39 = arith.addf %32, %38 : vector<16x16x128xf32>
    %40 = vector.extract_strided_slice %10 {offsets = [1, 1, 0], sizes = [16, 16, 128], strides = [1, 1, 1]} : vector<18x18x128xf32> to vector<16x16x128xf32>
    %c4 = arith.constant 4 : index
    %c0_13 = arith.constant 0 : index
    %41 = vector.load %arg4[%c4, %c0_13] : memref<9x128xf32, #tpu.memory_space<vmem>>, vector<1x128xf32>
    %42 = vector.shape_cast %41 : vector<1x128xf32> to vector<128xf32>
    %43 = vector.shape_cast %42 : vector<128xf32> to vector<1x1x128xf32>
    %44 = vector.broadcast %43 : vector<1x1x128xf32> to vector<16x16x128xf32>
    %45 = arith.mulf %40, %44 : vector<16x16x128xf32>
    %46 = arith.addf %39, %45 : vector<16x16x128xf32>
    %47 = vector.extract_strided_slice %10 {offsets = [1, 2, 0], sizes = [16, 16, 128], strides = [1, 1, 1]} : vector<18x18x128xf32> to vector<16x16x128xf32>
    %c5 = arith.constant 5 : index
    %c0_14 = arith.constant 0 : index
    %48 = vector.load %arg4[%c5, %c0_14] : memref<9x128xf32, #tpu.memory_space<vmem>>, vector<1x128xf32>
    %49 = vector.shape_cast %48 : vector<1x128xf32> to vector<128xf32>
    %50 = vector.shape_cast %49 : vector<128xf32> to vector<1x1x128xf32>
    %51 = vector.broadcast %50 : vector<1x1x128xf32> to vector<16x16x128xf32>
    %52 = arith.mulf %47, %51 : vector<16x16x128xf32>
    %53 = arith.addf %46, %52 : vector<16x16x128xf32>
    %54 = vector.extract_strided_slice %10 {offsets = [2, 0, 0], sizes = [16, 16, 128], strides = [1, 1, 1]} : vector<18x18x128xf32> to vector<16x16x128xf32>
    %c6 = arith.constant 6 : index
    %c0_15 = arith.constant 0 : index
    %55 = vector.load %arg4[%c6, %c0_15] : memref<9x128xf32, #tpu.memory_space<vmem>>, vector<1x128xf32>
    %56 = vector.shape_cast %55 : vector<1x128xf32> to vector<128xf32>
    %57 = vector.shape_cast %56 : vector<128xf32> to vector<1x1x128xf32>
    %58 = vector.broadcast %57 : vector<1x1x128xf32> to vector<16x16x128xf32>
    %59 = arith.mulf %54, %58 : vector<16x16x128xf32>
    %60 = arith.addf %53, %59 : vector<16x16x128xf32>
    %61 = vector.extract_strided_slice %10 {offsets = [2, 1, 0], sizes = [16, 16, 128], strides = [1, 1, 1]} : vector<18x18x128xf32> to vector<16x16x128xf32>
    %c7 = arith.constant 7 : index
    %c0_16 = arith.constant 0 : index
    %62 = vector.load %arg4[%c7, %c0_16] : memref<9x128xf32, #tpu.memory_space<vmem>>, vector<1x128xf32>
    %63 = vector.shape_cast %62 : vector<1x128xf32> to vector<128xf32>
    %64 = vector.shape_cast %63 : vector<128xf32> to vector<1x1x128xf32>
    %65 = vector.broadcast %64 : vector<1x1x128xf32> to vector<16x16x128xf32>
    %66 = arith.mulf %61, %65 : vector<16x16x128xf32>
    %67 = arith.addf %60, %66 : vector<16x16x128xf32>
    %68 = vector.extract_strided_slice %10 {offsets = [2, 2, 0], sizes = [16, 16, 128], strides = [1, 1, 1]} : vector<18x18x128xf32> to vector<16x16x128xf32>
    %c8 = arith.constant 8 : index
    %c0_17 = arith.constant 0 : index
    %69 = vector.load %arg4[%c8, %c0_17] : memref<9x128xf32, #tpu.memory_space<vmem>>, vector<1x128xf32>
    %70 = vector.shape_cast %69 : vector<1x128xf32> to vector<128xf32>
    %71 = vector.shape_cast %70 : vector<128xf32> to vector<1x1x128xf32>
    %72 = vector.broadcast %71 : vector<1x1x128xf32> to vector<16x16x128xf32>
    %73 = arith.mulf %68, %72 : vector<16x16x128xf32>
    %74 = arith.addf %67, %73 : vector<16x16x128xf32>
    %c0_18 = arith.constant 0 : index
    %c0_19 = arith.constant 0 : index
    %75 = vector.load %arg5[%c0_18, %c0_19] : memref<1x128xf32, #tpu.memory_space<vmem>>, vector<1x128xf32>
    %76 = vector.shape_cast %75 : vector<1x128xf32> to vector<1x1x128xf32>
    %77 = vector.broadcast %76 : vector<1x1x128xf32> to vector<16x16x128xf32>
    %78 = arith.addf %74, %77 : vector<16x16x128xf32>
    %c0_20 = arith.constant 0 : index
    %c0_21 = arith.constant 0 : index
    %c0_22 = arith.constant 0 : index
    %79 = vector.load %arg6[%c0_20, %c0_21, %c0_22] : memref<16x16x128xf32, #tpu.memory_space<vmem>>, vector<16x16x128xf32>
    tpu.vector_store %arg6[%c0_20, %c0_21, %c0_22], %78 {strides = array<i32>} : memref<16x16x128xf32, #tpu.memory_space<vmem>>, vector<16x16x128xf32>,
    return
  }
  func.func @transform_0(%arg0: i32) -> (i32, i32) {
    %c0_i32 = arith.constant 0 : i32
    %c0_i32_0 = arith.constant 0 : i32
    %c0_i32_1 = arith.constant 0 : i32
    return %c0_i32, %c0_i32_0 : i32, i32
  }
  func.func @transform_1(%arg0: i32) -> (i32, i32) {
    %c0_i32 = arith.constant 0 : i32
    %c0_i32_0 = arith.constant 0 : i32
    return %c0_i32, %arg0 : i32, i32
  }
  func.func @transform_2(%arg0: i32) -> (i32, i32) {
    %c0_i32 = arith.constant 0 : i32
    %c0_i32_0 = arith.constant 0 : i32
    return %c0_i32, %arg0 : i32, i32
  }
  func.func @transform_3(%arg0: i32) -> (i32, i32) {
    %c0_i32 = arith.constant 0 : i32
    %c0_i32_0 = arith.constant 0 : i32
    return %c0_i32, %arg0 : i32, i32
  }
  func.func @transform_4(%arg0: i32) -> (i32, i32) {
    %c0_i32 = arith.constant 0 : i32
    %c0_i32_0 = arith.constant 0 : i32
    return %c0_i32, %arg0 : i32, i32
  }
  func.func @transform_5(%arg0: i32) -> (i32, i32, i32) {
    %c0_i32 = arith.constant 0 : i32
    %c0_i32_0 = arith.constant 0 : i32
    %c0_i32_1 = arith.constant 0 : i32
    return %c0_i32, %c0_i32_0, %arg0 : i32, i32, i32
  }
}

</mosaic_0001>

<bundles_post_ra>
// kernel: tpu_custom_call.1
= control target key start
LH: loop header
LB: loop body
LE: loop exit
PB: predicated region body
PF: predicated region fallthrough
CT: control target
= control target key end

     0   :  { %10 = vsyncpa [#allocation3], 0  ;;  %s4328_s0 = inlined_call_operand.hbm [shape: f32[256,128], index: 0, kind: input, shape index: {}]   ;;  %s4329_s1 = inlined_call_operand.hbm [shape: f32[128,128], index: 1, kind: input, shape index: {}]   ;;  %s4330_s2 = inlined_call_operand.vmem [shape: f32[1,128], index: 2, kind: input, shape index: {}]   ;;  %s4331_s3 = inlined_call_operand.hbm [shape: f32[9,128], index: 3, kind: input, shape index: {}]   ;;  %s4332_s4 = inlined_call_operand.vmem [shape: f32[1,128], index: 4, kind: input, shape index: {}]   ;;  %s4333_s5 = inlined_call_operand.hbm [shape: f32[16,16,128], index: 5, kind: output, shape index: {}]  }
   0x1   :  { %11 = vsyncpa [#allocation6], 0 }
   0x2   :  { %12 = vsyncpa [#allocation4], 0  ;;  %s30_s20 = sshll.u32 %s4329_s1, 4  ;;  %s2330_s21 = smov [#allocation5]   ;;  %s31_s20 = int_to_ptr.hbm [resolvable:$true] %s30_s20 }
   0x3   :  { %s32_s22 = sshll.u32 %s2330_s21, 4  ;;  %s17_s25 = sshll.u32 %s4328_s0, 4  ;;  %s33_s22 = int_to_ptr.vmem [resolvable:$true] %s32_s22  ;;  %s18_s25 = int_to_ptr.hbm [resolvable:$true] %s17_s25 }
   0x4   :  { %s2331_s26 = smov 128   ;;  %s2332_s27 = smov 8  }
   0x5   :  { %38 = dma.hbm_to_vmem [thread:$0]  %s31_s20, 2048, %s33_s22, [#allocation6], %s2331_s26, %s2331_s26, %s2332_s27  }
   0x6   :  { %s2333_s28 = smov [#allocation2]   ;;  %s45_s1 = sshll.u32 %s4331_s3, 4  ;;  %s46_s1 = int_to_ptr.hbm [resolvable:$true] %s45_s1 }
   0x7   :  { %s19_s29 = sshll.u32 %s2333_s28, 4  ;;  %s2334_s0 = smov [#allocation7]   ;;  %s20_s29 = int_to_ptr.vmem [resolvable:$true] %s19_s29 }
   0x8   :  { %25 = dma.hbm_to_vmem [thread:$0]  %s18_s25, 4096, %s20_s29, [#allocation3], %s2331_s26, %s2331_s26, %s2332_s27  }
   0x9   :  { %s47_s7 = sshll.u32 %s2334_s0, 4  ;;  %s48_s7 = int_to_ptr.vmem [resolvable:$true] %s47_s7 }
   0xa   :  { %53 = dma.hbm_to_vmem [thread:$0]  %s46_s1, 256, %s48_s7, [#allocation6], %s2331_s26, %s2331_s26, %s2332_s27  }
   0xb   :  { %2324 = dma.done.wait [#allocation3], 4096  }
   0xc   :  { %2325 = vsyncadd [#allocation3], 4294963200 }
   0xd   :  { %2326 = dma.done.wait [#allocation6], 2304  }
   0xe   :  { %2327 = vsyncadd [#allocation6], 4294964992  ;;  %v115_v0 = vld [vmem:[#allocation5 + $0x78] sm:$0xff]  ;;  %v114_v1 = vld [vmem:[#allocation5 + $0x70] sm:$0xff]  ;;  %v2335_v48 = vmov 0.0   ;;  %vm266_vm0 = vcmask 1040384  }
   0xf   :  { %120 = vmatpush.msra.mxu0 %v115_v0  ;;  %2141 = vmatpush.msra.mxu1 %v115_v0  ;;  %v113_v2 = vld [vmem:[#allocation5 + $0x68] sm:$0xff]  ;;  %v112_v3 = vld [vmem:[#allocation5 + $0x60] sm:$0xff]  ;;  %v111_v4 = vld [vmem:[#allocation5 + $0x58] sm:$0xff]  ;;  %v2385_v49 = vrot.slane %v2335_v48, 7  ;;  %vm565_vm1 = vcmask 1046528   ;;  %vm808_vm2 = vcmask 1045504  }
  0x10   :  { %2142 = vmatpush.msra.mxu2 %v115_v0  ;;  %2143 = vmatpush.msra.mxu3 %v115_v0  ;;  %v110_v5 = vld [vmem:[#allocation5 + $0x50] sm:$0xff]  ;;  %v109_v6 = vld [vmem:[#allocation5 + $0x48] sm:$0xff]  ;;  %v108_v7 = vld [vmem:[#allocation5 + $0x40] sm:$0xff]  ;;  %s2127_s19 = sshll.u32 %s4333_s5, 4  ;;  %s2128_s19 = int_to_ptr.hbm [resolvable:$true] %s2127_s19 }
  0x11   :  { %121 = vmatpush.msra.mxu0 %v114_v1  ;;  %2144 = vmatpush.msra.mxu1 %v114_v1  ;;  %v107_v8 = vld [vmem:[#allocation5 + $0x38] sm:$0xff]  ;;  %v106_v9 = vld [vmem:[#allocation5 + $0x30] sm:$0xff]  ;;  %v105_v10 = vld [vmem:[#allocation5 + $0x28] sm:$0xff]  ;;  %4388 = vst [vmem:[#allocation12_spill] sm:$0xff] %v2385_v49  ;;  %v2391_v51 = vsel %vm266_vm0, 0.0, %v2385_v49  ;;  %v2395_v52 = vsel %vm266_vm0, %v2385_v49, 0.0 }
  0x12   :  { %2145 = vmatpush.msra.mxu2 %v114_v1  ;;  %2146 = vmatpush.msra.mxu3 %v114_v1  ;;  %v104_v11 = vld [vmem:[#allocation5 + $0x20] sm:$0xff]  ;;  %v103_v12 = vld [vmem:[#allocation5 + $0x18] sm:$0xff]  ;;  %v102_v13 = vld [vmem:[#allocation5 + $0x10] sm:$0xff]  ;;  %4389 = vst [vmem:[#allocation13_spill] sm:$0xff] %v2391_v51 }
  0x13   :  { %122 = vmatpush.msra.mxu0 %v113_v2  ;;  %2147 = vmatpush.msra.mxu1 %v113_v2  ;;  %v101_v14 = vld [vmem:[#allocation5 + $0x8] sm:$0xff]  ;;  %v100_v15 = vld [vmem:[#allocation5] sm:$0xff]  ;;  %v70_v24 = vld [vmem:[#allocation2 + $0x10] sm:$0xff]  ;;  %4390 = vst [vmem:[#allocation14_spill] sm:$0xff] %v2395_v52 }
  0x14   :  { %2148 = vmatpush.msra.mxu2 %v113_v2  ;;  %2149 = vmatpush.msra.mxu3 %v113_v2  ;;  %v68_v16 = vld [vmem:[#allocation2] sm:$0xff]  ;;  %v69_v20 = vld [vmem:[#allocation2 + $0x8] sm:$0xff]  ;;  %v78_v25 = vld [vmem:[#allocation2 + $0x50] sm:$0xff] }
  0x15   :  { %123 = vmatpush.msra.mxu0 %v112_v3  ;;  %2150 = vmatpush.msra.mxu1 %v112_v3  ;;  %v76_v17 = vld [vmem:[#allocation2 + $0x40] sm:$0xff]  ;;  %v77_v21 = vld [vmem:[#allocation2 + $0x48] sm:$0xff]  ;;  %v86_v26 = vld [vmem:[#allocation2 + $0x90] sm:$0xff] }
  0x16   :  { %2151 = vmatpush.msra.mxu2 %v112_v3  ;;  %2152 = vmatpush.msra.mxu3 %v112_v3  ;;  %v84_v18 = vld [vmem:[#allocation2 + $0x80] sm:$0xff]  ;;  %v85_v22 = vld [vmem:[#allocation2 + $0x88] sm:$0xff]  ;;  %v94_v27 = vld [vmem:[#allocation2 + $0xd0] sm:$0xff] }
  0x17   :  { %124 = vmatpush.msra.mxu0 %v111_v4  ;;  %2153 = vmatpush.msra.mxu1 %v111_v4  ;;  %v92_v19 = vld [vmem:[#allocation2 + $0xc0] sm:$0xff]  ;;  %v93_v23 = vld [vmem:[#allocation2 + $0xc8] sm:$0xff]  ;;  %v71_v28 = vld [vmem:[#allocation2 + $0x18] sm:$0xff] }
  0x18   :  { %2154 = vmatpush.msra.mxu2 %v111_v4  ;;  %2155 = vmatpush.msra.mxu3 %v111_v4  ;;  %v79_v29 = vld [vmem:[#allocation2 + $0x58] sm:$0xff]  ;;  %v72_v32 = vld [vmem:[#allocation2 + $0x20] sm:$0xff]  ;;  %v73_v36 = vld [vmem:[#allocation2 + $0x28] sm:$0xff] }
  0x19   :  { %125 = vmatpush.msra.mxu0 %v110_v5  ;;  %2156 = vmatpush.msra.mxu1 %v110_v5  ;;  %v87_v30 = vld [vmem:[#allocation2 + $0x98] sm:$0xff]  ;;  %v80_v33 = vld [vmem:[#allocation2 + $0x60] sm:$0xff]  ;;  %v81_v37 = vld [vmem:[#allocation2 + $0x68] sm:$0xff] }
  0x1a   :  { %2157 = vmatpush.msra.mxu2 %v110_v5  ;;  %2158 = vmatpush.msra.mxu3 %v110_v5  ;;  %v95_v31 = vld [vmem:[#allocation2 + $0xd8] sm:$0xff]  ;;  %v88_v34 = vld [vmem:[#allocation2 + $0xa0] sm:$0xff]  ;;  %v89_v38 = vld [vmem:[#allocation2 + $0xa8] sm:$0xff] }
  0x1b   :  { %126 = vmatpush.msra.mxu0 %v109_v6  ;;  %2159 = vmatpush.msra.mxu1 %v109_v6  ;;  %v96_v35 = vld [vmem:[#allocation2 + $0xe0] sm:$0xff]  ;;  %v97_v39 = vld [vmem:[#allocation2 + $0xe8] sm:$0xff]  ;;  %v74_v40 = vld [vmem:[#allocation2 + $0x30] sm:$0xff] }
  0x1c   :  { %2160 = vmatpush.msra.mxu2 %v109_v6  ;;  %2161 = vmatpush.msra.mxu3 %v109_v6  ;;  %v82_v41 = vld [vmem:[#allocation2 + $0x70] sm:$0xff]  ;;  %v75_v44 = vld [vmem:[#allocation2 + $0x38] sm:$0xff]  ;;  %v2387_v50 = vld [vmem:[#allocation7 + $0x1] ss:$0 sm:$0xff] }
  0x1d   :  { %127 = vmatpush.msra.mxu0 %v108_v7  ;;  %2162 = vmatpush.msra.mxu1 %v108_v7  ;;  %v90_v42 = vld [vmem:[#allocation2 + $0xb0] sm:$0xff]  ;;  %v83_v45 = vld [vmem:[#allocation2 + $0x78] sm:$0xff]  ;;  %v469_v53 = vmul.f32 %v2387_v50, %v2391_v51  ;;  %v470_v54 = vmul.f32 %v2387_v50, %v2385_v49  ;;  %v2401_v55 = vld [vmem:[#allocation7 + $0x2] ss:$0 sm:$0xff]  ;;  %v471_v56 = vmul.f32 %v2387_v50, %v2395_v52 }
  0x1e   :  { %2163 = vmatpush.msra.mxu2 %v108_v7  ;;  %2164 = vmatpush.msra.mxu3 %v108_v7  ;;  %v98_v43 = vld [vmem:[#allocation2 + $0xf0] sm:$0xff]  ;;  %v91_v46 = vld [vmem:[#allocation2 + $0xb8] sm:$0xff]  ;;  %v2408_v57 = vld [vmem:[%s4330_s2] ss:$0 sm:$0xff]  ;;  %v712_v61 = vmul.f32 %v2401_v55, %v2391_v51  ;;  %v713_v62 = vmul.f32 %v2401_v55, %v2385_v49  ;;  %v714_v2 = vmul.f32 %v2401_v55, %v2395_v52 }
  0x1f   :  { %128 = vmatpush.msra.mxu0 %v107_v8  ;;  %2165 = vmatpush.msra.mxu1 %v107_v8  ;;  %v99_v47 = vld [vmem:[#allocation2 + $0xf8] sm:$0xff]  ;;  %v2410_v58 = vld [vmem:[#allocation7] ss:$0 sm:$0xff]  ;;  %v566_v59 = vrot.slane %v469_v53, 1  ;;  %v567_v60 = vrot.slane %v470_v54, 1  ;;  %v569_v1 = vrot.slane %v471_v56, 1 }
  0x20   :  { %2166 = vmatpush.msra.mxu2 %v107_v8  ;;  %2167 = vmatpush.msra.mxu3 %v107_v8  ;;  %v403_v4 = vmul.f32 %v2410_v58, %v2391_v51  ;;  %v809_v7 = vrot.slane %v712_v61, 2  ;;  %v810_v8 = vrot.slane %v713_v62, 2 }
  0x21   :  { %129 = vmatpush.msra.mxu0 %v106_v9  ;;  %2168 = vmatpush.msra.mxu1 %v106_v9  ;;  %v568_v6 = vsel %vm565_vm1, %v566_v59, %v567_v60 }
  0x22   :  { %2169 = vmatpush.msra.mxu2 %v106_v9  ;;  %2170 = vmatpush.msra.mxu3 %v106_v9 }
  0x23   :  { %130 = vmatpush.msra.mxu0 %v105_v10  ;;  %2171 = vmatpush.msra.mxu1 %v105_v10 }
  0x24   :  { %2172 = vmatpush.msra.mxu2 %v105_v10  ;;  %2173 = vmatpush.msra.mxu3 %v105_v10  ;;  %v404_v10 = vmul.f32 %v2410_v58, %v2385_v49 }
  0x25   :  { %131 = vmatpush.msra.mxu0 %v104_v11  ;;  %2174 = vmatpush.msra.mxu1 %v104_v11 }
  0x26   :  { %2175 = vmatpush.msra.mxu2 %v104_v11  ;;  %2176 = vmatpush.msra.mxu3 %v104_v11 }
  0x27   :  { %132 = vmatpush.msra.mxu0 %v103_v12  ;;  %2177 = vmatpush.msra.mxu1 %v103_v12 }
  0x28   :  { %2178 = vmatpush.msra.mxu2 %v103_v12  ;;  %2179 = vmatpush.msra.mxu3 %v103_v12  ;;  %v570_v12 = vsel %vm565_vm1, %v567_v60, %v569_v1 }
  0x29   :  { %133 = vmatpush.msra.mxu0 %v102_v13  ;;  %2180 = vmatpush.msra.mxu1 %v102_v13 }
  0x2a   :  { %2181 = vmatpush.msra.mxu2 %v102_v13  ;;  %2182 = vmatpush.msra.mxu3 %v102_v13  ;;  %v812_v13 = vrot.slane %v714_v2, 2 }
  0x2b   :  { %134 = vmatpush.msra.mxu0 %v101_v14  ;;  %2183 = vmatpush.msra.mxu1 %v101_v14 }
  0x2c   :  { %2184 = vmatpush.msra.mxu2 %v101_v14  ;;  %2185 = vmatpush.msra.mxu3 %v101_v14 }
  0x2d   :  { %135 = vmatpush.msra.mxu0 %v100_v15  ;;  %2186 = vmatpush.msra.mxu1 %v100_v15 }
  0x2e   :  { %2187 = vmatpush.msra.mxu2 %v100_v15  ;;  %2188 = vmatpush.msra.mxu3 %v100_v15  ;;  %v678_v15 = vadd.f32 %v568_v6, %v403_v4 }
  0x2f   :  { %136 = vmatmul.f32.vlgmr.msra.gmra.mxu0 %v68_v16  ;;  %160 = vmatmul.f32.vlgmr.msra.gmra.mxu1 %v76_v17  ;;  %v2435_v16 = vld [vmem:[#allocation7 + $0x3] ss:$0 sm:$0xff]  ;;  %v811_v17 = vsel %vm808_vm2, %v809_v7, %v810_v8 }
  0x30   :  { %184 = vmatmul.f32.vlgmr.msra.gmra.mxu2 %v84_v18  ;;  %208 = vmatmul.f32.vlgmr.msra.gmra.mxu3 %v92_v19  ;;  %v2438_v18 = vld [vmem:[#allocation7 + $0x4] ss:$0 sm:$0xff]  ;;  %v2440_v19 = vld [vmem:[#allocation7 + $0x5] ss:$0 sm:$0xff] }
  0x37   :  { %139 = vmatmul.f32.gmra.mxu0 %v69_v20  ;;  %163 = vmatmul.f32.gmra.mxu1 %v77_v21  ;;  %v679_v20 = vadd.f32 %v570_v12, %v404_v10 }
  0x38   :  { %187 = vmatmul.f32.gmra.mxu2 %v85_v22  ;;  %211 = vmatmul.f32.gmra.mxu3 %v93_v23 }
  0x3f   :  { %142 = vmatmul.f32.gmra.mxu0 %v70_v24  ;;  %166 = vmatmul.f32.gmra.mxu1 %v78_v25  ;;  %v813_v24 = vsel %vm808_vm2, %v810_v8, %v812_v13 }
  0x40   :  { %190 = vmatmul.f32.gmra.mxu2 %v86_v26  ;;  %214 = vmatmul.f32.gmra.mxu3 %v94_v27  ;;  %v921_v26 = vadd.f32 %v811_v17, %v678_v15 }
  0x47   :  { %145 = vmatmul.f32.gmra.mxu0 %v71_v28  ;;  %169 = vmatmul.f32.gmra.mxu1 %v79_v29 }
  0x48   :  { %193 = vmatmul.f32.gmra.mxu2 %v87_v30  ;;  %217 = vmatmul.f32.gmra.mxu3 %v95_v31 }
  0x4f   :  { %148 = vmatmul.f32.gmra.mxu0 %v72_v32  ;;  %172 = vmatmul.f32.gmra.mxu1 %v80_v33  ;;  %v2462_v32 = vld [vmem:[#allocation7 + $0x7] ss:$0 sm:$0xff] }
  0x50   :  { %196 = vmatmul.f32.gmra.mxu2 %v88_v34  ;;  %220 = vmatmul.f32.gmra.mxu3 %v96_v35 }
  0x57   :  { %151 = vmatmul.f32.gmra.mxu0 %v73_v36  ;;  %175 = vmatmul.f32.gmra.mxu1 %v81_v37  ;;  %v2470_v36 = vadd.f32 %v813_v24, %v679_v20 }
  0x58   :  { %199 = vmatmul.f32.gmra.mxu2 %v89_v38  ;;  %223 = vmatmul.f32.gmra.mxu3 %v97_v39 }
  0x5f   :  { %154 = vmatmul.f32.gmra.mxu0 %v74_v40  ;;  %178 = vmatmul.f32.gmra.mxu1 %v82_v41  ;;  %v2482_v41 = vld [vmem:[#allocation7 + $0x8] ss:$0 sm:$0xff] }
  0x60   :  { %202 = vmatmul.f32.gmra.mxu2 %v90_v42  ;;  %226 = vmatmul.f32.gmra.mxu3 %v98_v43 }
  0x67   :  { %157 = vmatmul.f32.gmra.mxu0 %v75_v44  ;;  %181 = vmatmul.f32.gmra.mxu1 %v83_v45  ;;  %v2490_v45 = vld [vmem:[#allocation7 + $0x6] ss:$0 sm:$0xff] }
  0x68   :  { %205 = vmatmul.f32.gmra.mxu2 %v91_v46  ;;  %229 = vmatmul.f32.gmra.mxu3 %v99_v47 }
  0xac   :  { %v137_v63 = vpop.f32.mrf.mxu0  ;;  %v161_v0 = vpop.f32.mrf.mxu1 }
  0xad   :  { %v2419_v3 = vadd.f32 %v2408_v57, %v137_v63  ;;  %v2424_v5 = vadd.f32 %v2408_v57, %v161_v0 }
  0xaf   :  { %v269_v9 = vrot.slane %v2419_v3, 7  ;;  %v4336_v11 = vrot.slane %v2424_v5, 7 }
  0xb1   :  { %v368_v14 = vsel %vm266_vm0, 0.0, %v269_v9  ;;  %v372_v22 = vsel %vm266_vm0, 0.0, %v4336_v11 }
  0xb2   :  { %v2443_v21 = vmul.f32 %v2387_v50, %v368_v14  ;;  %v2450_v25 = vmul.f32 %v2401_v55, %v368_v14  ;;  %v955_v27 = vmul.f32 %v2435_v16, %v368_v14  ;;  %v2454_v28 = vmul.f32 %v2438_v18, %v368_v14 }
  0xb3   :  { %v185_v23 = vpop.f32.mrf.mxu2  ;;  %v2457_v29 = vmul.f32 %v2440_v19, %v368_v14  ;;  %v209_v30 = vpop.f32.mrf.mxu3  ;;  %v2460_v31 = vmul.f32 %v2387_v50, %v372_v22  ;;  %v2473_v37 = vmul.f32 %v2410_v58, %v368_v14  ;;  %v2477_v39 = vmul.f32 %v2410_v58, %v372_v22 }
  0xb4   :  { %v2465_v33 = vadd.f32 %v2408_v57, %v185_v23  ;;  %v2468_v34 = vadd.f32 %v2408_v57, %v209_v30  ;;  %v140_v35 = vpop.f32.mrf.mxu0  ;;  %v2480_v40 = vmul.f32 %v2401_v55, %v372_v22  ;;  %v2485_v43 = vadd.f32 %v955_v27, %v921_v26  ;;  %v164_v47 = vpop.f32.mrf.mxu1 }
  0xb5   :  { %v2488_v44 = vmul.f32 %v2438_v18, %v372_v22  ;;  %v141_v56 = vadd.f32 %v2408_v57, %v140_v35  ;;  %v2499_v60 = vmul.f32 %v2440_v19, %v372_v22  ;;  %v2502_v61 = vmul.f32 %v2462_v32, %v372_v22 }
  0xb6   :  { %v4335_v46 = vrot.slane %v2465_v33, 7  ;;  %v4334_v54 = vrot.slane %v2468_v34, 7  ;;  %v2509_v0 = vmul.f32 %v2435_v16, %v372_v22  ;;  %v2512_v1 = vmul.f32 %v2482_v41, %v372_v22 }
  0xb7   :  { %v2515_v2 = vadd.f32 %v2408_v57, %v164_v47  ;;  %v2519_v6 = vmul.f32 %v2490_v45, %v372_v22  ;;  %v270_v14 = vrot.slane %v141_v56, 7  ;;  %v4396_v52 = vrot.slane %v2443_v21, 1 }
  0xb8   :  { %v376_v62 = vsel %vm266_vm0, 0.0, %v4335_v46  ;;  %4391 = vst [vmem:[#allocation15_spill] sm:$0xff] %v2509_v0  ;;  %v380_v13 = vsel %vm266_vm0, 0.0, %v4334_v54 }
  0xb9   :  { %4392 = vst [vmem:[#allocation16_spill] sm:$0xff] %v2519_v6  ;;  %v2522_v7 = vmul.f32 %v2387_v50, %v376_v62  ;;  %v2525_v8 = vmul.f32 %v2401_v55, %v376_v62  ;;  %v2528_v10 = vmul.f32 %v2438_v18, %v376_v62  ;;  %v2531_v12 = vmul.f32 %v2440_v19, %v376_v62 }
  0xba   :  { %v2539_v20 = vmul.f32 %v2462_v32, %v376_v62  ;;  %v2542_v22 = vmul.f32 %v2482_v41, %v376_v62  ;;  %v2546_v24 = vmul.f32 %v2410_v58, %v376_v62  ;;  %v2549_v26 = vmul.f32 %v2435_v16, %v376_v62 }
  0xbb   :  { %v282_v27 = vrot.slane %v2515_v2, 7  ;;  %v2555_v47 = vmul.f32 %v2490_v45, %v376_v62  ;;  %v2558_v56 = vmul.f32 %v2410_v58, %v380_v13  ;;  %v2563_v17 = vmul.f32 %v2387_v50, %v380_v13 }
  0xbc   :  { %4393 = vst [vmem:[#allocation17_spill] sm:$0xff] %v2549_v26  ;;  %v271_v2 = vsel %vm266_vm0, %v269_v9, %v270_v14  ;;  %v2571_v62 = vmul.f32 %v2401_v55, %v380_v13  ;;  %v385_v46 = vsel %vm266_vm0, %v270_v14, 0.0  ;;  %v2575_v54 = vmul.f32 %v2435_v16, %v380_v13 }
  0xbd   :  { %4394 = vst [vmem:[#allocation18_spill] sm:$0xff] %v2555_v47  ;;  %v473_v23 = vmul.f32 %v2387_v50, %v271_v2  ;;  %v474_v15 = vmul.f32 %v2387_v50, %v385_v46  ;;  %v716_v3 = vmul.f32 %v2401_v55, %v271_v2  ;;  %v2581_v9 = vmul.f32 %v2438_v18, %v380_v13 }
  0xbe   :  { %4395 = vst [vmem:[#allocation19_spill] sm:$0xff] %v2575_v54  ;;  %v717_v30 = vmul.f32 %v2401_v55, %v385_v46  ;;  %v1022_v35 = vmul.f32 %v2438_v18, %v271_v2  ;;  %v1023_v4 = vmul.f32 %v2438_v18, %v385_v46  ;;  %v2588_v48 = vmul.f32 %v2440_v19, %v380_v13 }
  0xbf   :  { %v572_v63 = vrot.slane %v473_v23, 1  ;;  %v574_v53 = vrot.slane %v474_v15, 1  ;;  %v815_v59 = vrot.slane %v716_v3, 2  ;;  %v406_v11 = vmul.f32 %v2410_v58, %v271_v2 }
  0xc0   :  { %v817_v42 = vrot.slane %v717_v30, 2  ;;  %v956_v38 = vmul.f32 %v2435_v16, %v271_v2  ;;  %v4397_v54 = vrot.slane %v2450_v25, 2  ;;  %v1118_v15 = vrot.slane %v1022_v35, 1  ;;  %v188_v30 = vpop.f32.mrf.mxu2 }
  0xc1   :  { %v573_v49 = vsel %vm565_vm1, %v4396_v52, %v572_v63  ;;  %v575_v51 = vsel %vm565_vm1, %v572_v63, %v574_v53  ;;  %v1120_v26 = vrot.slane %v1023_v4, 1  ;;  %v2603_v6 = vmul.f32 %v2490_v45, %v380_v13 }
  0xc2   :  { %v816_v23 = vsel %vm808_vm2, %v4397_v54, %v815_v59  ;;  %v680_v3 = vadd.f32 %v573_v49, %v2473_v37  ;;  %v681_v14 = vadd.f32 %v575_v51, %v406_v11  ;;  %v818_v47 = vsel %vm808_vm2, %v815_v59, %v817_v42 }
  0xc3   :  { %4398 = vst [vmem:[#allocation20_spill] sm:$0xff] %v2603_v6  ;;  %v2606_v52 = vmul.f32 %v2462_v32, %v380_v13  ;;  %v1264_v21 = vmul.f32 %v2440_v19, %v271_v2  ;;  %v1265_v49 = vmul.f32 %v2440_v19, %v385_v46  ;;  %v4399_v51 = vrot.slane %v2424_v5, 7 }
  0xc4   :  { %v2609_v25 = vadd.f32 %v816_v23, %v680_v3  ;;  %v2611_v53 = vadd.f32 %v818_v47, %v681_v14  ;;  %v2621_v42 = vmul.f32 %v2482_v41, %v380_v13  ;;  %v988_v54 = vadd.f32 %v956_v38, %v2470_v36 }
  0xc5   :  { %v2617_v11 = vsel %vm266_vm0, %v4399_v51, %v282_v27  ;;  %v389_v59 = vsel %vm266_vm0, %v282_v27, 0.0  ;;  %v4401_v63 = vrot.slane %v2454_v28, 1  ;;  %v1121_v46 = vsel %vm565_vm1, %v1118_v15, %v1120_v26 }
  0xc6   :  { %4400 = vst [vmem:[#allocation21_spill] sm:$0xff] %v2617_v11  ;;  %v485_v5 = vmul.f32 %v2387_v50, %v2617_v11  ;;  %v486_v35 = vmul.f32 %v2387_v50, %v389_v59  ;;  %v1360_v47 = vrot.slane %v1264_v21, 2  ;;  %v728_v13 = vmul.f32 %v2401_v55, %v2617_v11 }
  0xc7   :  { %v1119_v4 = vsel %vm565_vm1, %v4401_v63, %v1118_v15  ;;  %v729_v2 = vmul.f32 %v2401_v55, %v389_v59  ;;  %v1034_v36 = vmul.f32 %v2438_v18, %v2617_v11  ;;  %v1362_v38 = vrot.slane %v1265_v49, 2 }
  0xc8   :  { %v592_v28 = vrot.slane %v485_v5, 1  ;;  %v594_v27 = vrot.slane %v486_v35, 1  ;;  %v1035_v14 = vmul.f32 %v2438_v18, %v389_v59  ;;  %v1229_v23 = vadd.f32 %v1119_v4, %v2485_v43 }
  0xc9   :  { %v1276_v15 = vmul.f32 %v2440_v19, %v2617_v11  ;;  %v1277_v3 = vmul.f32 %v2440_v19, %v389_v59  ;;  %v1230_v63 = vadd.f32 %v1121_v46, %v988_v54  ;;  %v4402_v49 = vrot.slane %v2460_v31, 1 }
  0xca   :  { %v4403_v35 = vrot.slane %v2457_v29, 2  ;;  %v835_v37 = vrot.slane %v728_v13, 2  ;;  %v837_v43 = vrot.slane %v729_v2, 2  ;;  %v1138_v4 = vrot.slane %v1034_v36, 1  ;;  %v212_v36 = vpop.f32.mrf.mxu3 }
  0xcb   :  { %v593_v5 = vsel %vm565_vm1, %v4402_v49, %v592_v28  ;;  %v1363_v6 = vsel %vm808_vm2, %v1360_v47, %v1362_v38  ;;  %v414_v21 = vmul.f32 %v2410_v58, %v2617_v11  ;;  %v595_v51 = vsel %vm565_vm1, %v592_v28, %v594_v27 }
  0xcc   :  { %v1361_v26 = vsel %vm808_vm2, %v4403_v35, %v1360_v47  ;;  %v1140_v54 = vrot.slane %v1035_v14, 1  ;;  %v688_v31 = vadd.f32 %v593_v5, %v2477_v39  ;;  %v1380_v49 = vrot.slane %v1276_v15, 2 }
  0xcd   :  { %v2655_v46 = vadd.f32 %v1361_v26, %v1229_v23  ;;  %v1382_v29 = vrot.slane %v1277_v3, 2  ;;  %v2658_v0 = vadd.f32 %v1363_v6, %v1230_v63  ;;  %v1581_v13 = vmul.f32 %v2462_v32, %v2617_v11  ;;  %v143_v3 = vpop.f32.mrf.mxu0  ;;  %v167_v63 = vpop.f32.mrf.mxu1 }
  0xce   :  { %v1582_v2 = vmul.f32 %v2462_v32, %v389_v59  ;;  %v189_v47 = vadd.f32 %v2408_v57, %v188_v30  ;;  %v689_v38 = vadd.f32 %v595_v51, %v414_v21  ;;  %v4404_v28 = vrot.slane %v2480_v40, 2 }
  0xcf   :  { %v838_v14 = vsel %vm808_vm2, %v835_v37, %v837_v43  ;;  %v4405_v39 = vrot.slane %v2488_v44, 1  ;;  %v2674_v26 = vsel %vm565_vm1, %v1138_v4, %v1140_v54  ;;  %v1823_v23 = vmul.f32 %v2482_v41, %v2617_v11 }
  0xd0   :  { %v836_v27 = vsel %vm808_vm2, %v4404_v28, %v835_v37  ;;  %4407 = vst [vmem:[#allocation23_spill] sm:$0xff] %v2674_v26  ;;  %v1824_v30 = vmul.f32 %v2482_v41, %v389_v59  ;;  %v294_v15 = vrot.slane %v189_v47, 7  ;;  %v4408_v21 = vrot.slane %v2499_v60, 2 }
  0xd1   :  { %v2671_v6 = vsel %vm565_vm1, %v4405_v39, %v1138_v4  ;;  %v2679_v40 = vadd.f32 %v836_v27, %v688_v31  ;;  %v2687_v44 = vsel %vm808_vm2, %v1380_v49, %v1382_v29  ;;  %v213_v51 = vadd.f32 %v2408_v57, %v212_v36 }
  0xd2   :  { %4406 = vst [vmem:[#allocation22_spill] sm:$0xff] %v2671_v6  ;;  %v2684_v37 = vsel %vm808_vm2, %v4408_v21, %v1380_v49  ;;  %v1683_v5 = vrot.slane %v1581_v13, 1  ;;  %v1685_v35 = vrot.slane %v1582_v2, 1  ;;  %v4411_v43 = vrot.slane %v2465_v33, 7 }
  0xd3   :  { %4409 = vst [vmem:[#allocation24_spill] sm:$0xff] %v2684_v37  ;;  %v393_v4 = vsel %vm266_vm0, %v294_v15, 0.0  ;;  %v2702_v49 = vadd.f32 %v2408_v57, %v143_v3  ;;  %v1925_v29 = vrot.slane %v1823_v23, 2  ;;  %v1927_v13 = vrot.slane %v1824_v30, 2 }
  0xd4   :  { %4410 = vst [vmem:[#allocation25_spill] sm:$0xff] %v2687_v44  ;;  %v2693_v59 = vsel %vm266_vm0, %v4411_v43, %v294_v15  ;;  %v498_v54 = vmul.f32 %v2387_v50, %v393_v4  ;;  %v741_v33 = vmul.f32 %v2401_v55, %v393_v4  ;;  %v2706_v2 = vadd.f32 %v2408_v57, %v167_v63 }
  0xd5   :  { %4412 = vst [vmem:[#allocation26_spill] sm:$0xff] %v2693_v59  ;;  %v497_v60 = vmul.f32 %v2387_v50, %v2693_v59  ;;  %v740_v31 = vmul.f32 %v2401_v55, %v2693_v59  ;;  %v1046_v28 = vmul.f32 %v2438_v18, %v2693_v59  ;;  %v1047_v27 = vmul.f32 %v2438_v18, %v393_v4 }
  0xd6   :  { %v614_v36 = vrot.slane %v498_v54, 1  ;;  %v2711_v39 = vadd.f32 %v838_v14, %v689_v38  ;;  %v1288_v3 = vmul.f32 %v2440_v19, %v2693_v59  ;;  %v306_v23 = vrot.slane %v213_v51, 7 }
  0xd7   :  { %v612_v47 = vrot.slane %v497_v60, 1  ;;  %v855_v15 = vrot.slane %v740_v31, 2  ;;  %v4413_v30 = vrot.slane %v2502_v61, 1  ;;  %v2721_v63 = vsel %vm565_vm1, %v1683_v5, %v1685_v35 }
  0xd8   :  { %4415 = vst [vmem:[#allocation28_spill] sm:$0xff] %v2721_v63  ;;  %v1289_v43 = vmul.f32 %v2440_v19, %v393_v4  ;;  %v4416_v38 = vrot.slane %v2512_v1, 2  ;;  %v4418_v54 = vrot.slane %v2522_v7, 1  ;;  %v857_v61 = vrot.slane %v741_v33, 2 }
  0xd9   :  { %v2718_v21 = vsel %vm565_vm1, %v4413_v30, %v1683_v5  ;;  %v2735_v30 = vsel %vm808_vm2, %v1925_v29, %v1927_v13  ;;  %v615_v5 = vsel %vm565_vm1, %v612_v47, %v614_v36  ;;  %v1158_v35 = vrot.slane %v1046_v28, 1 }
  0xda   :  { %4414 = vst [vmem:[#allocation27_spill] sm:$0xff] %v2718_v21  ;;  %v2728_v14 = vsel %vm808_vm2, %v4416_v38, %v1925_v29  ;;  %v613_v51 = vsel %vm565_vm1, %v4418_v54, %v612_v47  ;;  %v1160_v63 = vrot.slane %v1047_v27, 1  ;;  %v422_v1 = vmul.f32 %v2410_v58, %v2693_v59 }
  0xdb   :  { %4417 = vst [vmem:[#allocation29_spill] sm:$0xff] %v2728_v14  ;;  %v4420_v38 = vrot.slane %v2525_v8, 2  ;;  %v1400_v7 = vrot.slane %v1288_v3, 2  ;;  %v1593_v33 = vmul.f32 %v2462_v32, %v2693_v59  ;;  %v696_v54 = vadd.f32 %v613_v51, %v2546_v24 }
  0xdc   :  { %4419 = vst [vmem:[#allocation30_spill] sm:$0xff] %v2735_v30  ;;  %v1402_v31 = vrot.slane %v1289_v43, 2  ;;  %v4421_v29 = vrot.slane %v2468_v34, 7  ;;  %v397_v47 = vsel %vm266_vm0, %v306_v23, 0.0  ;;  %v697_v36 = vadd.f32 %v615_v5, %v422_v1 }
  0xdd   :  { %v856_v60 = vsel %vm808_vm2, %v4420_v38, %v855_v15  ;;  %v858_v28 = vsel %vm808_vm2, %v855_v15, %v857_v61  ;;  %v1594_v8 = vmul.f32 %v2462_v32, %v393_v4  ;;  %v4423_v3 = vrot.slane %v2528_v10, 1 }
  0xde   :  { %v2749_v13 = vsel %vm266_vm0, %v4421_v29, %v306_v23  ;;  %v2762_v34 = vsel %vm565_vm1, %v1158_v35, %v1160_v63  ;;  %v1835_v43 = vmul.f32 %v2482_v41, %v2693_v59  ;;  %v510_v23 = vmul.f32 %v2387_v50, %v397_v47 }
  0xdf   :  { %4422 = vst [vmem:[#allocation31_spill] sm:$0xff] %v2749_v13  ;;  %v509_v27 = vmul.f32 %v2387_v50, %v2749_v13  ;;  %v2759_v24 = vsel %vm565_vm1, %v4423_v3, %v1158_v35  ;;  %v4426_v15 = vrot.slane %v2531_v12, 2  ;;  %v1703_v61 = vrot.slane %v1593_v33, 1 }
  0xe0   :  { %4424 = vst [vmem:[#allocation32_spill] sm:$0xff] %v2759_v24  ;;  %v752_v10 = vmul.f32 %v2401_v55, %v2749_v13  ;;  %v2775_v1 = vsel %vm808_vm2, %v1400_v7, %v1402_v31  ;;  %v1836_v63 = vmul.f32 %v2482_v41, %v393_v4  ;;  %v634_v35 = vrot.slane %v510_v23, 1 }
  0xe1   :  { %4425 = vst [vmem:[#allocation33_spill] sm:$0xff] %v2762_v34  ;;  %v2770_v51 = vsel %vm808_vm2, %v4426_v15, %v1400_v7  ;;  %v632_v5 = vrot.slane %v509_v27, 1  ;;  %v753_v38 = vmul.f32 %v2401_v55, %v397_v47  ;;  %v2779_v29 = vadd.f32 %v856_v60, %v696_v54 }
  0xe2   :  { %4427 = vst [vmem:[#allocation34_spill] sm:$0xff] %v2770_v51  ;;  %v1705_v3 = vrot.slane %v1594_v8, 1  ;;  %v4429_v12 = vrot.slane %v2563_v17, 1  ;;  %v1058_v33 = vmul.f32 %v2438_v18, %v2749_v13  ;;  %v2786_v27 = vadd.f32 %v858_v28, %v697_v36 }
  0xe3   :  { %4428 = vst [vmem:[#allocation35_spill] sm:$0xff] %v2775_v1  ;;  %v1945_v51 = vrot.slane %v1835_v43, 2  ;;  %v430_v31 = vmul.f32 %v2410_v58, %v2749_v13  ;;  %v1059_v4 = vmul.f32 %v2438_v18, %v397_v47  ;;  %v4430_v7 = vrot.slane %v2539_v20, 1 }
  0xe4   :  { %v633_v15 = vsel %vm565_vm1, %v4429_v12, %v632_v5  ;;  %v635_v17 = vsel %vm565_vm1, %v632_v5, %v634_v35  ;;  %v875_v54 = vrot.slane %v752_v10, 2  ;;  %v1300_v8 = vmul.f32 %v2440_v19, %v2749_v13 }
  0xe5   :  { %v2794_v60 = vsel %vm565_vm1, %v4430_v7, %v1703_v61  ;;  %v1947_v23 = vrot.slane %v1836_v63, 2  ;;  %v704_v36 = vadd.f32 %v633_v15, %v2558_v56  ;;  %v877_v28 = vrot.slane %v753_v38, 2 }
  0xe6   :  { %4431 = vst [vmem:[#allocation36_spill] sm:$0xff] %v2794_v60  ;;  %v1301_v43 = vmul.f32 %v2440_v19, %v397_v47  ;;  %v2802_v12 = vsel %vm565_vm1, %v1703_v61, %v1705_v3  ;;  %v1178_v1 = vrot.slane %v1058_v33, 1  ;;  %v1605_v20 = vmul.f32 %v2462_v32, %v2749_v13 }
  0xe7   :  { %4432 = vst [vmem:[#allocation37_spill] sm:$0xff] %v2802_v12  ;;  %v1606_v7 = vmul.f32 %v2462_v32, %v397_v47  ;;  %v705_v5 = vadd.f32 %v635_v17, %v430_v31  ;;  %v1180_v10 = vrot.slane %v1059_v4, 1  ;;  %v1847_v35 = vmul.f32 %v2482_v41, %v2749_v13 }
  0xe8   :  { %v1848_v63 = vmul.f32 %v2482_v41, %v397_v47  ;;  %v4433_v56 = vrot.slane %v2542_v22, 2  ;;  %v4435_v61 = vrot.slane %v2571_v62, 2  ;;  %v1420_v15 = vrot.slane %v1300_v8, 2 }
  0xe9   :  { %v4436_v33 = vrot.slane %v2702_v49, 7  ;;  %v2822_v4 = vsel %vm808_vm2, %v1945_v51, %v1947_v23  ;;  %v878_v17 = vsel %vm808_vm2, %v875_v54, %v877_v28  ;;  %v1422_v22 = vrot.slane %v1301_v43, 2 }
  0xea   :  { %v2813_v38 = vsel %vm808_vm2, %v4433_v56, %v1945_v51  ;;  %v876_v3 = vsel %vm808_vm2, %v4435_v61, %v875_v54  ;;  %4437 = vst [vmem:[#allocation39_spill] sm:$0xff] %v2822_v4  ;;  %v4438_v56 = vrot.slane %v2581_v9, 1  ;;  %v1723_v62 = vrot.slane %v1605_v20, 1 }
  0xeb   :  { %4434 = vst [vmem:[#allocation38_spill] sm:$0xff] %v2813_v38  ;;  %v369_v31 = vsel %vm266_vm0, 0.0, %v4436_v33  ;;  %v2825_v47 = vadd.f32 %v876_v3, %v704_v36  ;;  %v1725_v61 = vrot.slane %v1606_v7, 1  ;;  %v2833_v12 = vadd.f32 %v878_v17, %v705_v5 }
  0xec   :  { %v2830_v38 = vsel %vm565_vm1, %v4438_v56, %v1178_v1  ;;  %v957_v8 = vmul.f32 %v2435_v16, %v369_v31  ;;  %v2836_v33 = vsel %vm565_vm1, %v1178_v1, %v1180_v10  ;;  %v1965_v51 = vrot.slane %v1847_v35, 2 }
  0xed   :  { %4439 = vst [vmem:[#allocation40_spill] sm:$0xff] %v2830_v38  ;;  %v1967_v23 = vrot.slane %v1848_v63, 2  ;;  %v4442_v54 = vrot.slane %v2588_v48, 2  ;;  %v2844_v9 = vmul.f32 %v2387_v50, %v369_v31  ;;  %v2847_v28 = vmul.f32 %v2401_v55, %v369_v31 }
  0xee   :  { %4440 = vst [vmem:[#allocation41_spill] sm:$0xff] %v2833_v12  ;;  %v2850_v43 = vadd.f32 %v957_v8, %v2609_v25  ;;  %v2853_v20 = vsel %vm808_vm2, %v1420_v15, %v1422_v22  ;;  %v2856_v1 = vmul.f32 %v2438_v18, %v369_v31  ;;  %v2859_v48 = vmul.f32 %v2440_v19, %v369_v31  ;;  %v146_v8 = vpop.f32.mrf.mxu0 }
  0xef   :  { %4441 = vst [vmem:[#allocation42_spill] sm:$0xff] %v2836_v33  ;;  %v2841_v36 = vsel %vm808_vm2, %v4442_v54, %v1420_v15  ;;  %v1505_v7 = vmul.f32 %v2490_v45, %v369_v31  ;;  %v4445_v5 = vrot.slane %v2606_v52, 1  ;;  %v2868_v35 = vsel %vm565_vm1, %v1723_v62, %v1725_v61  ;;  %v191_v15 = vpop.f32.mrf.mxu2  ;;  %v215_v61 = vpop.f32.mrf.mxu3 }
  0xf0   :  { %4443 = vst [vmem:[#allocation43_spill] sm:$0xff] %v2841_v36  ;;  %v2871_v25 = vmul.f32 %v2410_v58, %v369_v31  ;;  %v4448_v63 = vrot.slane %v2706_v2, 7  ;;  %v4449_v17 = vrot.slane %v2621_v42, 2  ;;  %v2882_v52 = vsel %vm808_vm2, %v1965_v51, %v1967_v23 }
  0xf1   :  { %4444 = vst [vmem:[#allocation44_spill] sm:$0xff] %v2853_v20  ;;  %v2865_v10 = vsel %vm565_vm1, %v4445_v5, %v1723_v62  ;;  %v2885_v56 = vmul.f32 %v2462_v32, %v369_v31  ;;  %v2888_v62 = vmul.f32 %v2482_v41, %v369_v31  ;;  %v2908_v5 = vadd.f32 %v2408_v57, %v191_v15 }
  0xf2   :  { %4446 = vst [vmem:[#allocation45_spill] sm:$0xff] %v2865_v10  ;;  %v373_v3 = vsel %vm266_vm0, 0.0, %v4448_v63  ;;  %v2879_v22 = vsel %vm808_vm2, %v4449_v17, %v1965_v51  ;;  %v2901_v17 = vadd.f32 %v1505_v7, %v2655_v46  ;;  %v2911_v54 = vadd.f32 %v2408_v57, %v215_v61 }
  0xf3   :  { %4447 = vst [vmem:[#allocation46_spill] sm:$0xff] %v2868_v35  ;;  %v2893_v42 = vmul.f32 %v2387_v50, %v373_v3  ;;  %v2896_v63 = vmul.f32 %v2401_v55, %v373_v3  ;;  %v965_v31 = vmul.f32 %v2435_v16, %v373_v3  ;;  %v170_v35 = vpop.f32.mrf.mxu1  ;;  %v2917_v46 = vmul.f32 %v2410_v58, %v373_v3 }
  0xf4   :  { %4450 = vst [vmem:[#allocation47_spill] sm:$0xff] %v2879_v22  ;;  %v147_v22 = vadd.f32 %v2408_v57, %v146_v8  ;;  %v2920_v7 = vmul.f32 %v2440_v19, %v373_v3  ;;  %v2925_v61 = vmul.f32 %v2462_v32, %v373_v3  ;;  %v4343_v8 = vrot.slane %v2908_v5, 7 }
  0xf5   :  { %4451 = vst [vmem:[#allocation48_spill] sm:$0xff] %v2882_v52  ;;  %v2905_v52 = vmul.f32 %v2438_v18, %v373_v3  ;;  %v2929_v20 = vmul.f32 %v2490_v45, %v373_v3  ;;  %v2932_v23 = vmul.f32 %v2482_v41, %v373_v3  ;;  %v2936_v36 = vadd.f32 %v2408_v57, %v170_v35 }
  0xf6   :  { %4452 = vst [vmem:[#allocation49_spill] sm:$0xff] %v2911_v54  ;;  %v2939_v10 = vadd.f32 %v965_v31, %v2679_v40  ;;  %v377_v33 = vsel %vm266_vm0, 0.0, %v4343_v8  ;;  %v273_v38 = vrot.slane %v147_v22, 7  ;;  %v4460_v60 = vrot.slane %v2911_v54, 7 }
  0xf7   :  { %4453 = vst [vmem:[#allocation50_spill] sm:$0xff] %v2929_v20  ;;  %v2947_v3 = vmul.f32 %v2387_v50, %v377_v33  ;;  %v2950_v51 = vmul.f32 %v2401_v55, %v377_v33  ;;  %v973_v35 = vmul.f32 %v2435_v16, %v377_v33  ;;  %v2955_v31 = vmul.f32 %v2438_v18, %v377_v33 }
  0xf8   :  { %v2958_v15 = vmul.f32 %v2440_v19, %v377_v33  ;;  %v2961_v22 = vmul.f32 %v2462_v32, %v377_v33  ;;  %v2965_v4 = vmul.f32 %v2482_v41, %v377_v33  ;;  %v2970_v34 = vsel %vm266_vm0, 0.0, %v4460_v60 }
  0xf9   :  { %4454 = vst [vmem:[#allocation51_spill] sm:$0xff] %v2947_v3  ;;  %v2974_v24 = vmul.f32 %v2410_v58, %v377_v33  ;;  %v2977_v30 = vmul.f32 %v2490_v45, %v377_v33  ;;  %v4463_v14 = vrot.slane %v2702_v49, 7  ;;  %v386_v20 = vsel %vm266_vm0, %v273_v38, 0.0 }
  0xfa   :  { %4455 = vst [vmem:[#allocation52_spill] sm:$0xff] %v2950_v51  ;;  %v2986_v60 = vadd.f32 %v973_v35, %v2779_v29  ;;  %v2990_v40 = vmul.f32 %v2387_v50, %v2970_v34  ;;  %v3002_v29 = vmul.f32 %v2401_v55, %v2970_v34  ;;  %v3006_v35 = vmul.f32 %v2435_v16, %v2970_v34 }
  0xfb   :  { %4456 = vst [vmem:[#allocation53_spill] sm:$0xff] %v2955_v31  ;;  %v274_v8 = vsel %vm266_vm0, %v4463_v14, %v273_v38  ;;  %v2997_v14 = vmul.f32 %v2410_v58, %v2970_v34  ;;  %v3010_v33 = vmul.f32 %v2438_v18, %v2970_v34  ;;  %v3015_v49 = vmul.f32 %v2440_v19, %v2970_v34 }
  0xfc   :  { %4457 = vst [vmem:[#allocation54_spill] sm:$0xff] %v2958_v15  ;;  %v3019_v38 = vmul.f32 %v2490_v45, %v2970_v34  ;;  %v3023_v44 = vmul.f32 %v2462_v32, %v2970_v34  ;;  %v408_v21 = vmul.f32 %v2410_v58, %v274_v8  ;;  %v476_v37 = vmul.f32 %v2387_v50, %v274_v8 }
  0xfd   :  { %4458 = vst [vmem:[#allocation55_spill] sm:$0xff] %v2961_v22  ;;  %v477_v26 = vmul.f32 %v2387_v50, %v386_v20  ;;  %v720_v6 = vmul.f32 %v2401_v55, %v386_v20  ;;  %v958_v13 = vmul.f32 %v2435_v16, %v274_v8  ;;  %v1025_v59 = vmul.f32 %v2438_v18, %v274_v8 }
  0xfe   :  { %4459 = vst [vmem:[#allocation56_spill] sm:$0xff] %v2965_v4  ;;  %v577_v11 = vrot.slane %v476_v37, 1  ;;  %v1267_v12 = vmul.f32 %v2440_v19, %v274_v8  ;;  %v4469_v54 = vrot.slane %v2844_v9, 1  ;;  %v4470_v51 = vrot.slane %v2847_v28, 2 }
  0xff   :  { %4461 = vst [vmem:[#allocation57_spill] sm:$0xff] %v2974_v24  ;;  %v822_v15 = vrot.slane %v720_v6, 2  ;;  %v990_v4 = vadd.f32 %v958_v13, %v2611_v53  ;;  %v1123_v22 = vrot.slane %v1025_v59, 1  ;;  %v4471_v53 = vrot.slane %v2856_v1, 1 }
 0x100   :  { %4462 = vst [vmem:[#allocation58_spill] sm:$0xff] %v2977_v30  ;;  %v719_v30 = vmul.f32 %v2401_v55, %v274_v8  ;;  %v578_v31 = vsel %vm565_vm1, %v4469_v54, %v577_v11 }
 0x101   :  { %4464 = vst [vmem:[#allocation59_spill] sm:$0xff] %v2986_v60  ;;  %v682_v37 = vadd.f32 %v578_v31, %v2871_v25  ;;  %v1124_v59 = vsel %vm565_vm1, %v4471_v53, %v1123_v22  ;;  %v1506_v25 = vmul.f32 %v2490_v45, %v274_v8 }
 0x102   :  { %4465 = vst [vmem:[#allocation60_spill] sm:$0xff] %v2990_v40  ;;  %v820_v40 = vrot.slane %v719_v30, 2  ;;  %v1231_v9 = vadd.f32 %v1124_v59, %v2850_v43 }
 0x103   :  { %4466 = vst [vmem:[#allocation61_spill] sm:$0xff] %v2997_v14  ;;  %v579_v14 = vrot.slane %v477_v26, 1  ;;  %v1268_v26 = vmul.f32 %v2440_v19, %v386_v20 }
 0x104   :  { %4467 = vst [vmem:[#allocation62_spill] sm:$0xff] %v3002_v29  ;;  %v821_v3 = vsel %vm808_vm2, %v4470_v51, %v820_v40  ;;  %v823_v6 = vsel %vm808_vm2, %v820_v40, %v822_v15  ;;  %v1572_v15 = vmul.f32 %v2462_v32, %v274_v8  ;;  %v1573_v40 = vmul.f32 %v2462_v32, %v386_v20 }
 0x105   :  { %4468 = vst [vmem:[#allocation63_spill] sm:$0xff] %v3019_v38  ;;  %v1026_v38 = vmul.f32 %v2438_v18, %v386_v20  ;;  %v580_v24 = vsel %vm565_vm1, %v577_v11, %v579_v14  ;;  %v1365_v11 = vrot.slane %v1267_v12, 2  ;;  %v1367_v54 = vrot.slane %v1268_v26, 2 }
 0x106   :  { %v683_v30 = vadd.f32 %v580_v24, %v408_v21  ;;  %v3050_v28 = vadd.f32 %v821_v3, %v682_v37  ;;  %v4472_v21 = vrot.slane %v2859_v48, 2  ;;  %v1538_v3 = vadd.f32 %v1506_v25, %v2658_v0 }
 0x107   :  { %v1125_v60 = vrot.slane %v1026_v38, 1  ;;  %v1368_v1 = vsel %vm808_vm2, %v1365_v11, %v1367_v54  ;;  %v1668_v31 = vrot.slane %v1572_v15, 1  ;;  %v1815_v48 = vmul.f32 %v2482_v41, %v386_v20 }
 0x108   :  { %v3052_v51 = vadd.f32 %v823_v6, %v683_v30  ;;  %v1366_v24 = vsel %vm808_vm2, %v4472_v21, %v1365_v11  ;;  %v4474_v38 = vrot.slane %v2706_v2, 7  ;;  %v4476_v20 = vrot.slane %v2885_v56, 1 }
 0x109   :  { %v1126_v13 = vsel %vm565_vm1, %v1123_v22, %v1125_v60  ;;  %v3061_v43 = vadd.f32 %v1366_v24, %v1231_v9  ;;  %v1670_v22 = vrot.slane %v1573_v40, 1  ;;  %v4473_v60 = vrot.slane %v2936_v36, 7 }
 0x10a   :  { %v1232_v14 = vadd.f32 %v1126_v13, %v990_v4  ;;  %v1814_v4 = vmul.f32 %v2482_v41, %v274_v8  ;;  %v1669_v53 = vsel %vm565_vm1, %v4476_v20, %v1668_v31  ;;  %v1912_v59 = vrot.slane %v1815_v48, 2 }
 0x10b   :  { %v3073_v26 = vsel %vm266_vm0, %v4474_v38, %v4473_v60  ;;  %v4475_v30 = vmov %v4473_v60  ;;  %v1671_v2 = vsel %vm565_vm1, %v1668_v31, %v1670_v22  ;;  %v1779_v9 = vadd.f32 %v1669_v53, %v2901_v17 }
 0x10c   :  { %v3063_v12 = vadd.f32 %v1368_v1, %v1232_v14  ;;  %v1910_v37 = vrot.slane %v1814_v4, 2  ;;  %v390_v6 = vsel %vm266_vm0, %v4475_v30, 0.0  ;;  %v416_v0 = vmul.f32 %v2410_v58, %v3073_v26  ;;  %v3094_v14 = vld [vmem:[%s4332_s4] ss:$0 sm:$0xff] }
 0x10d   :  { %v488_v8 = vmul.f32 %v2387_v50, %v3073_v26  ;;  %v489_v13 = vmul.f32 %v2387_v50, %v390_v6  ;;  %v1780_v36 = vadd.f32 %v1671_v2, %v1538_v3  ;;  %v4477_v11 = vrot.slane %v2888_v62, 2 }
 0x10e   :  { %v1913_v25 = vsel %vm808_vm2, %v1910_v37, %v1912_v59  ;;  %v731_v24 = vmul.f32 %v2401_v55, %v3073_v26  ;;  %v732_v1 = vmul.f32 %v2401_v55, %v390_v6  ;;  %v4478_v62 = vrot.slane %v2893_v42, 1 }
 0x10f   :  { %v1911_v54 = vsel %vm808_vm2, %v4477_v11, %v1910_v37  ;;  %v597_v56 = vrot.slane %v488_v8, 1  ;;  %v599_v21 = vrot.slane %v489_v13, 1  ;;  %v2022_v15 = vadd.f32 %v1913_v25, %v1780_v36 }
 0x110   :  { %v2021_v17 = vadd.f32 %v1911_v54, %v1779_v9  ;;  %v966_v3 = vmul.f32 %v2435_v16, %v3073_v26  ;;  %v840_v22 = vrot.slane %v731_v24, 2  ;;  %v842_v48 = vrot.slane %v732_v1, 2 }
 0x111   :  { %v598_v40 = vsel %vm565_vm1, %v4478_v62, %v597_v56  ;;  %v600_v4 = vsel %vm565_vm1, %v597_v56, %v599_v21  ;;  %v2058_v38 = vadd.f32 %v3094_v14, %v2022_v15  ;;  %v4479_v42 = vrot.slane %v2896_v63, 2 }
 0x112   :  { %v690_v31 = vadd.f32 %v598_v40, %v2917_v46  ;;  %v2057_v60 = vadd.f32 %v3094_v14, %v2021_v17  ;;  %v691_v37 = vadd.f32 %v600_v4, %v416_v0  ;;  %v998_v30 = vadd.f32 %v966_v3, %v2711_v39 }
 0x113   :  { %v841_v8 = vsel %vm808_vm2, %v4479_v42, %v840_v22  ;;  %v843_v20 = vsel %vm808_vm2, %v840_v22, %v842_v48  ;;  %v1037_v53 = vmul.f32 %v2438_v18, %v3073_v26  ;;  %v1038_v46 = vmul.f32 %v2438_v18, %v390_v6  ;;  %2090 = vst [vmem:[#allocation8 + $0x8] sm:$0xff] %v2058_v38  ;;  %v4513_v38 = vld [vmem:[#allocation41_spill] sm:$0xff] }
 0x114   :  { %2089 = vst [vmem:[#allocation8] sm:$0xff] %v2057_v60  ;;  %v3117_v2 = vadd.f32 %v841_v8, %v690_v31  ;;  %v3119_v59 = vadd.f32 %v843_v20, %v691_v37  ;;  %v1279_v0 = vmul.f32 %v2440_v19, %v3073_v26  ;;  %v1280_v39 = vmul.f32 %v2440_v19, %v390_v6 }
 0x115   :  { %v1143_v13 = vrot.slane %v1037_v53, 1  ;;  %v1145_v9 = vrot.slane %v1038_v46, 1  ;;  %v1584_v36 = vmul.f32 %v2462_v32, %v3073_v26  ;;  %v3129_v11 = vadd.f32 %v3006_v35, %v2825_v47  ;;  %v194_v47 = vpop.f32.mrf.mxu2  ;;  %v218_v35 = vpop.f32.mrf.mxu3 }
 0x116   :  { %v3133_v54 = vmul.f32 %v2482_v41, %v2970_v34  ;;  %v1585_v56 = vmul.f32 %v2462_v32, %v390_v6  ;;  %v1826_v25 = vmul.f32 %v2482_v41, %v3073_v26  ;;  %v4480_v21 = vrot.slane %v2905_v52, 1  ;;  %v173_v53 = vpop.f32.mrf.mxu1 }
 0x117   :  { %v1146_v1 = vsel %vm565_vm1, %v1143_v13, %v1145_v9  ;;  %v1688_v17 = vrot.slane %v1584_v36, 1  ;;  %v1827_v15 = vmul.f32 %v2482_v41, %v390_v6  ;;  %v1385_v40 = vrot.slane %v1279_v0, 2 }
 0x118   :  { %v1144_v24 = vsel %vm565_vm1, %v4480_v21, %v1143_v13  ;;  %v1240_v34 = vadd.f32 %v1146_v1, %v998_v30  ;;  %v1387_v3 = vrot.slane %v1280_v39, 2  ;;  %v4481_v4 = vrot.slane %v2925_v61, 1 }
 0x119   :  { %v1239_v62 = vadd.f32 %v1144_v24, %v2939_v10  ;;  %v1690_v52 = vrot.slane %v1585_v56, 1  ;;  %v1930_v22 = vrot.slane %v1826_v25, 2  ;;  %v1932_v48 = vrot.slane %v1827_v15, 2  ;;  %v149_v10 = vpop.f32.mrf.mxu0 }
 0x11a   :  { %v3147_v31 = vsel %vm565_vm1, %v4481_v4, %v1688_v17  ;;  %v195_v6 = vadd.f32 %v2408_v57, %v194_v47  ;;  %v219_v37 = vadd.f32 %v2408_v57, %v218_v35  ;;  %v4484_v61 = vrot.slane %v2932_v23, 2 }
 0x11b   :  { %4482 = vst [vmem:[#allocation64_spill] sm:$0xff] %v3147_v31  ;;  %v3155_v42 = vsel %vm565_vm1, %v1688_v17, %v1690_v52  ;;  %v3163_v20 = vsel %vm808_vm2, %v1930_v22, %v1932_v48  ;;  %v4487_v0 = vrot.slane %v2920_v7, 2  ;;  %v1388_v13 = vsel %vm808_vm2, %v1385_v40, %v1387_v3 }
 0x11c   :  { %4483 = vst [vmem:[#allocation65_spill] sm:$0xff] %v3155_v42  ;;  %v3160_v8 = vsel %vm808_vm2, %v4484_v61, %v1930_v22  ;;  %v297_v9 = vrot.slane %v195_v6, 7  ;;  %v3172_v56 = vadd.f32 %v1388_v13, %v1240_v34  ;;  %v3176_v23 = vmul.f32 %v2490_v45, %v3073_v26 }
 0x11d   :  { %4485 = vst [vmem:[#allocation66_spill] sm:$0xff] %v3160_v8  ;;  %v1386_v39 = vsel %vm808_vm2, %v4487_v0, %v1385_v40  ;;  %v3179_v25 = vadd.f32 %v2408_v57, %v149_v10  ;;  %v4489_v21 = vrot.slane %v2908_v5, 7  ;;  %v309_v1 = vrot.slane %v219_v37, 7  ;;  %v197_v22 = vpop.f32.mrf.mxu2  ;;  %v221_v48 = vpop.f32.mrf.mxu3  ;;  %v4492_v10 = vld [vmem:[#allocation52_spill] sm:$0xff] }
 0x11e   :  { %4486 = vst [vmem:[#allocation67_spill] sm:$0xff] %v3163_v20  ;;  %v3170_v36 = vadd.f32 %v1386_v39, %v1239_v62  ;;  %v394_v24 = vsel %vm266_vm0, %v297_v9, 0.0  ;;  %v3188_v17 = vadd.f32 %v2408_v57, %v173_v53  ;;  %v4493_v61 = vrot.slane %v4492_v10, 2  ;;  %v4494_v39 = vld [vmem:[#allocation57_spill] sm:$0xff] }
 0x11f   :  { %4488 = vst [vmem:[#allocation68_spill] sm:$0xff] %v3176_v23  ;;  %v3184_v7 = vsel %vm266_vm0, %v4489_v21, %v297_v9  ;;  %v501_v26 = vmul.f32 %v2387_v50, %v394_v24  ;;  %v744_v47 = vmul.f32 %v2401_v55, %v394_v24  ;;  %v1050_v62 = vmul.f32 %v2438_v18, %v394_v24  ;;  %v4495_v21 = vld [vmem:[#allocation53_spill] sm:$0xff] }
 0x120   :  { %v424_v15 = vmul.f32 %v2410_v58, %v3184_v7  ;;  %v500_v45 = vmul.f32 %v2387_v50, %v3184_v7  ;;  %v743_v5 = vmul.f32 %v2401_v55, %v3184_v7  ;;  %v974_v35 = vmul.f32 %v2435_v16, %v3184_v7  ;;  %v4490_v16 = vld [vmem:[#allocation51_spill] sm:$0xff] }
 0x121   :  { %v1049_v57 = vmul.f32 %v2438_v18, %v3184_v7  ;;  %v619_v58 = vrot.slane %v501_v26, 1  ;;  %v3205_v3 = vmul.f32 %v2440_v19, %v3184_v7  ;;  %v862_v50 = vrot.slane %v744_v47, 2 }
 0x122   :  { %v617_v34 = vrot.slane %v500_v45, 1  ;;  %v860_v40 = vrot.slane %v743_v5, 2  ;;  %v1006_v4 = vadd.f32 %v974_v35, %v2786_v27  ;;  %v1165_v55 = vrot.slane %v1050_v62, 1  ;;  %v3228_v35 = vld [vmem:[%s4330_s2] ss:$0 sm:$0xff] }
 0x123   :  { %v1163_v52 = vrot.slane %v1049_v57, 1  ;;  %v4491_v6 = vrot.slane %v4490_v16, 1  ;;  %v3216_v0 = vmul.f32 %v2440_v19, %v394_v24  ;;  %v4496_v45 = vrot.slane %v4495_v21, 1 }
 0x124   :  { %v620_v18 = vsel %vm565_vm1, %v617_v34, %v619_v58  ;;  %v861_v53 = vsel %vm808_vm2, %v4493_v61, %v860_v40  ;;  %v863_v9 = vsel %vm808_vm2, %v860_v40, %v862_v50  ;;  %v3231_v19 = vadd.f32 %v3228_v35, %v197_v22 }
 0x125   :  { %v618_v37 = vsel %vm565_vm1, %v4491_v6, %v617_v34  ;;  %v699_v27 = vadd.f32 %v620_v18, %v424_v15  ;;  %v1164_v26 = vsel %vm565_vm1, %v4496_v45, %v1163_v52  ;;  %v1166_v5 = vsel %vm565_vm1, %v1163_v52, %v1165_v55  ;;  %v4498_v34 = vld [vmem:[#allocation49_spill] sm:$0xff]  ;;  %v4501_v52 = vld [vmem:[#allocation59_spill] sm:$0xff] }
 0x126   :  { %v698_v13 = vadd.f32 %v618_v37, %v4494_v39  ;;  %v3234_v15 = vadd.f32 %v3228_v35, %v221_v48  ;;  %v4499_v58 = vrot.slane %v4498_v34, 7  ;;  %v398_v50 = vsel %vm266_vm0, %v309_v1, 0.0  ;;  %v3261_v39 = vld [vmem:[#allocation7 + $0x1] ss:$0 sm:$0xff]  ;;  %v4507_v34 = vld [vmem:[#allocation56_spill] sm:$0xff] }
 0x127   :  { %v3238_v62 = vadd.f32 %v863_v9, %v699_v27  ;;  %v1247_v55 = vadd.f32 %v1164_v26, %v4501_v52  ;;  %v1405_v16 = vrot.slane %v3205_v3, 2  ;;  %v1596_v22 = vmul.f32 %v2462_v32, %v3184_v7  ;;  %v3268_v27 = vld [vmem:[#allocation7 + $0x2] ss:$0 sm:$0xff] }
 0x128   :  { %4497 = vst [vmem:[#allocation51_spill] sm:$0xff] %v3234_v15  ;;  %v3236_v57 = vadd.f32 %v861_v53, %v698_v13  ;;  %v3243_v40 = vsel %vm266_vm0, %v4499_v58, %v309_v1  ;;  %v1597_v48 = vmul.f32 %v2462_v32, %v394_v24  ;;  %v3251_v6 = vadd.f32 %v1166_v5, %v1006_v4  ;;  %v3257_v53 = vld [vmem:[#allocation7] ss:$0 sm:$0xff] }
 0x129   :  { %4500 = vst [vmem:[#allocation52_spill] sm:$0xff] %v3243_v40  ;;  %v1407_v37 = vrot.slane %v3216_v0, 2  ;;  %v1838_v18 = vmul.f32 %v2482_v41, %v3184_v7  ;;  %v1839_v10 = vmul.f32 %v2482_v41, %v394_v24  ;;  %v1708_v61 = vrot.slane %v1596_v22, 1  ;;  %v4503_v24 = vld [vmem:[#allocation55_spill] sm:$0xff] }
 0x12a   :  { %v1710_v1 = vrot.slane %v1597_v48, 1  ;;  %v432_v3 = vmul.f32 %v3257_v53, %v3243_v40  ;;  %v3265_v32 = vmul.f32 %v3261_v39, %v3243_v40  ;;  %v513_v13 = vmul.f32 %v3261_v39, %v398_v50 }
 0x12b   :  { %v1950_v4 = vrot.slane %v1838_v18, 2  ;;  %v1952_v0 = vrot.slane %v1839_v10, 2  ;;  %v3272_v41 = vmul.f32 %v3268_v27, %v3243_v40  ;;  %v4504_v9 = vrot.slane %v4503_v24, 1  ;;  %v3293_v24 = vld [vmem:[#allocation7 + $0x3] ss:$0 sm:$0xff] }
 0x12c   :  { %v3280_v45 = vsel %vm565_vm1, %v1708_v61, %v1710_v1  ;;  %v4358_v26 = vrot.slane %v3265_v32, 1  ;;  %v756_v5 = vmul.f32 %v3268_v27, %v398_v50  ;;  %v4508_v58 = vrot.slane %v4507_v34, 2  ;;  %v3297_v1 = vld [vmem:[#allocation7 + $0x4] ss:$0 sm:$0xff] }
 0x12d   :  { %4502 = vst [vmem:[#allocation57_spill] sm:$0xff] %v3272_v41  ;;  %v3277_v21 = vsel %vm565_vm1, %v4504_v9, %v1708_v61  ;;  %v3290_v22 = vsel %vm808_vm2, %v1950_v4, %v1952_v0  ;;  %v639_v48 = vrot.slane %v513_v13, 1  ;;  %v4359_v18 = vrot.slane %v3272_v41, 2  ;;  %v3308_v13 = vld [vmem:[#allocation7 + $0x5] ss:$0 sm:$0xff] }
 0x12e   :  { %4505 = vst [vmem:[#allocation53_spill] sm:$0xff] %v3277_v21  ;;  %v3287_v52 = vsel %vm808_vm2, %v4508_v58, %v1950_v4  ;;  %v882_v10 = vrot.slane %v756_v5, 2  ;;  %v982_v61 = vmul.f32 %v3293_v24, %v3243_v40  ;;  %v1061_v9 = vmul.f32 %v3297_v1, %v3243_v40  ;;  %v4511_v58 = vld [vmem:[#allocation54_spill] sm:$0xff] }
 0x12f   :  { %4506 = vst [vmem:[#allocation49_spill] sm:$0xff] %v3280_v45  ;;  %v1062_v34 = vmul.f32 %v3297_v1, %v398_v50  ;;  %v4512_v63 = vrot.slane %v4511_v58, 2  ;;  %v640_v0 = vsel %vm565_vm1, %v4358_v26, %v639_v48  ;;  %v1303_v5 = vmul.f32 %v3308_v13, %v3243_v40  ;;  %v3317_v45 = vld [vmem:[#allocation7 + $0x7] ss:$0 sm:$0xff] }
 0x130   :  { %4509 = vst [vmem:[#allocation59_spill] sm:$0xff] %v3287_v52  ;;  %v1304_v46 = vmul.f32 %v3308_v13, %v398_v50  ;;  %v707_v30 = vadd.f32 %v640_v0, %v432_v3  ;;  %v883_v47 = vsel %vm808_vm2, %v4359_v18, %v882_v10  ;;  %v1014_v58 = vadd.f32 %v982_v61, %v4513_v38  ;;  %v3327_v10 = vld [vmem:[#allocation7 + $0x8] ss:$0 sm:$0xff] }
 0x131   :  { %4510 = vst [vmem:[#allocation55_spill] sm:$0xff] %v3290_v22  ;;  %v1406_v4 = vsel %vm808_vm2, %v4512_v63, %v1405_v16  ;;  %v1183_v60 = vrot.slane %v1061_v9, 1  ;;  %v1185_v63 = vrot.slane %v1062_v34, 1  ;;  %v1425_v22 = vrot.slane %v1303_v5, 2  ;;  %v3334_v9 = vld [vmem:[#allocation7 + $0x6] ss:$0 sm:$0xff] }
 0x132   :  { %v1427_v52 = vrot.slane %v1304_v46, 2  ;;  %v1608_v48 = vmul.f32 %v3317_v45, %v3243_v40  ;;  %v3321_v26 = vadd.f32 %v883_v47, %v707_v30  ;;  %v4515_v21 = vrot.slane %v3010_v33, 1 }
 0x133   :  { %v1609_v0 = vmul.f32 %v3317_v45, %v398_v50  ;;  %v1850_v38 = vmul.f32 %v3327_v10, %v3243_v40  ;;  %v1408_v46 = vsel %vm808_vm2, %v1405_v16, %v1407_v37  ;;  %v3332_v61 = vadd.f32 %v1406_v4, %v1247_v55  ;;  %v200_v40 = vpop.f32.mrf.mxu2 }
 0x134   :  { %4514 = vst [vmem:[#allocation56_spill] sm:$0xff] %v3321_v26  ;;  %v1184_v3 = vsel %vm565_vm1, %v4515_v21, %v1183_v60  ;;  %v3338_v30 = vmul.f32 %v3334_v9, %v3184_v7  ;;  %v1186_v33 = vsel %vm565_vm1, %v1183_v60, %v1185_v63  ;;  %v1728_v21 = vrot.slane %v1608_v48, 1 }
 0x135   :  { %v1255_v47 = vadd.f32 %v1184_v3, %v3129_v11  ;;  %v1730_v34 = vrot.slane %v1609_v0, 1  ;;  %v1851_v5 = vmul.f32 %v3327_v10, %v398_v50  ;;  %v1256_v18 = vadd.f32 %v1186_v33, %v1014_v58 }
 0x136   :  { %4516 = vst [vmem:[#allocation54_spill] sm:$0xff] %v3338_v30  ;;  %v4517_v20 = vrot.slane %v3015_v49, 2  ;;  %v1970_v16 = vrot.slane %v1850_v38, 2  ;;  %v4518_v37 = vrot.slane %v3179_v25, 7  ;;  %v1428_v7 = vsel %vm808_vm2, %v1425_v22, %v1427_v52  ;;  %v176_v30 = vpop.f32.mrf.mxu1 }
 0x137   :  { %v4519_v60 = vrot.slane %v3023_v44, 1  ;;  %v3356_v63 = vsel %vm565_vm1, %v1728_v21, %v1730_v34  ;;  %v1972_v50 = vrot.slane %v1851_v5, 2  ;;  %v4522_v49 = vrot.slane %v3133_v54, 2 }
 0x138   :  { %v1426_v55 = vsel %vm808_vm2, %v4517_v20, %v1425_v22  ;;  %v370_v4 = vsel %vm266_vm0, 0.0, %v4518_v37  ;;  %4521 = vst [vmem:[#allocation69_spill] sm:$0xff] %v3356_v63  ;;  %v4360_v44 = vrot.slane %v3188_v17, 7  ;;  %v3381_v0 = vadd.f32 %v1408_v46, %v3251_v6 }
 0x139   :  { %v3353_v11 = vsel %vm565_vm1, %v4519_v60, %v1728_v21  ;;  %v3361_v20 = vsel %vm808_vm2, %v4522_v49, %v1970_v16  ;;  %v3364_v58 = vmul.f32 %v3261_v39, %v370_v4  ;;  %v3367_v48 = vmul.f32 %v3268_v27, %v370_v4 }
 0x13a   :  { %4520 = vst [vmem:[#allocation41_spill] sm:$0xff] %v3353_v11  ;;  %v3371_v52 = vsel %vm808_vm2, %v1970_v16, %v1972_v50  ;;  %v959_v22 = vmul.f32 %v3293_v24, %v370_v4  ;;  %v3375_v3 = vmul.f32 %v3297_v1, %v370_v4  ;;  %v3378_v54 = vmul.f32 %v3308_v13, %v370_v4  ;;  %v152_v11 = vpop.f32.mrf.mxu0 }
 0x13b   :  { %4523 = vst [vmem:[#allocation70_spill] sm:$0xff] %v3361_v20  ;;  %v3383_v38 = vadd.f32 %v1426_v55, %v1255_v47  ;;  %v3385_v33 = vadd.f32 %v1428_v7, %v1256_v18  ;;  %v1507_v21 = vmul.f32 %v3334_v9, %v370_v4  ;;  %v3389_v34 = vmul.f32 %v3257_v53, %v370_v4 }
 0x13c   :  { %4524 = vst [vmem:[#allocation71_spill] sm:$0xff] %v3371_v52  ;;  %v3392_v5 = vadd.f32 %v959_v22, %v3050_v28  ;;  %v3395_v16 = vmul.f32 %v3317_v45, %v370_v4  ;;  %v3398_v37 = vmul.f32 %v3327_v10, %v370_v4  ;;  %v374_v47 = vsel %vm266_vm0, 0.0, %v4360_v44 }
 0x13d   :  { %4525 = vst [vmem:[#allocation72_spill] sm:$0xff] %v3381_v0  ;;  %v3408_v28 = vmul.f32 %v3261_v39, %v374_v47  ;;  %v3411_v7 = vmul.f32 %v3268_v27, %v374_v47  ;;  %v3415_v60 = vadd.f32 %v1507_v21, %v3061_v43  ;;  %v967_v50 = vmul.f32 %v3293_v24, %v374_v47 }
 0x13e   :  { %4526 = vst [vmem:[#allocation73_spill] sm:$0xff] %v3385_v33  ;;  %v3419_v49 = vmul.f32 %v3297_v1, %v374_v47  ;;  %v3422_v22 = vmul.f32 %v3308_v13, %v374_v47  ;;  %v3427_v46 = vmul.f32 %v3257_v53, %v374_v47  ;;  %v1515_v6 = vmul.f32 %v3334_v9, %v374_v47 }
 0x13f   :  { %v3432_v21 = vadd.f32 %v967_v50, %v3117_v2  ;;  %v3435_v44 = vmul.f32 %v3317_v45, %v374_v47  ;;  %v3438_v4 = vmul.f32 %v3327_v10, %v374_v47  ;;  %v4527_v20 = vrot.slane %v3231_v19, 7 }
 0x140   :  { %v3455_v55 = vadd.f32 %v1515_v6, %v3170_v36  ;;  %v4534_v42 = vrot.slane %v3234_v15, 7  ;;  %v177_v41 = vadd.f32 %v3228_v35, %v176_v30  ;;  %v3509_v26 = vadd.f32 %v3228_v35, %v200_v40 }
 0x141   :  { %v378_v63 = vsel %vm266_vm0, 0.0, %v4527_v20  ;;  %v4542_v0 = vrot.slane %v3364_v58, 1 }
 0x142   :  { %v3447_v43 = vmul.f32 %v3261_v39, %v378_v63  ;;  %v3450_v2 = vmul.f32 %v3268_v27, %v378_v63  ;;  %v975_v50 = vmul.f32 %v3293_v24, %v378_v63  ;;  %v3458_v18 = vmul.f32 %v3297_v1, %v378_v63 }
 0x143   :  { %v3461_v52 = vmul.f32 %v3308_v13, %v378_v63  ;;  %v1523_v20 = vmul.f32 %v3334_v9, %v378_v63  ;;  %v3470_v36 = vmul.f32 %v3317_v45, %v378_v63  ;;  %v3473_v6 = vmul.f32 %v3257_v53, %v378_v63 }
 0x144   :  { %4528 = vst [vmem:[#allocation74_spill] sm:$0xff] %v3450_v2  ;;  %v3467_v31 = vadd.f32 %v975_v50, %v3236_v57  ;;  %v3478_v29 = vmul.f32 %v3327_v10, %v378_v63  ;;  %v3484_v57 = vsel %vm266_vm0, 0.0, %v4534_v42  ;;  %v153_v50 = vadd.f32 %v3228_v35, %v152_v11 }
 0x145   :  { %4529 = vst [vmem:[#allocation75_spill] sm:$0xff] %v3458_v18  ;;  %v3490_v47 = vadd.f32 %v1523_v20, %v3332_v61  ;;  %v1531_v63 = vmul.f32 %v3334_v9, %v3484_v57  ;;  %v3496_v8 = vmul.f32 %v3317_v45, %v3484_v57  ;;  %v3501_v11 = vmul.f32 %v3327_v10, %v3484_v57 }
 0x146   :  { %4530 = vst [vmem:[#allocation76_spill] sm:$0xff] %v3461_v52  ;;  %v276_v30 = vrot.slane %v153_v50, 7  ;;  %v288_v23 = vrot.slane %v177_v41, 7  ;;  %v4540_v42 = vrot.slane %v3179_v25, 7  ;;  %v4541_v41 = vrot.slane %v3188_v17, 7 }
 0x147   :  { %4531 = vst [vmem:[#allocation77_spill] sm:$0xff] %v3467_v31  ;;  %v3505_v61 = vadd.f32 %v1531_v63, %v3383_v38  ;;  %v4543_v18 = vrot.slane %v3367_v48, 2 }
 0x148   :  { %4532 = vst [vmem:[#allocation78_spill] sm:$0xff] %v3470_v36  ;;  %v277_v15 = vsel %vm266_vm0, %v4540_v42, %v276_v30  ;;  %v3519_v50 = vsel %vm266_vm0, %v4541_v41, %v288_v23 }
 0x149   :  { %4533 = vst [vmem:[#allocation79_spill] sm:$0xff] %v3478_v29  ;;  %v410_v38 = vmul.f32 %v3257_v53, %v277_v15  ;;  %v479_v63 = vmul.f32 %v3261_v39, %v277_v15  ;;  %v722_v20 = vmul.f32 %v3268_v27, %v277_v15  ;;  %v960_v25 = vmul.f32 %v3293_v24, %v277_v15 }
 0x14a   :  { %4535 = vst [vmem:[#allocation80_spill] sm:$0xff] %v3484_v57  ;;  %v387_v57 = vsel %vm266_vm0, %v276_v30, 0.0  ;;  %v1028_v42 = vmul.f32 %v3297_v1, %v277_v15 }
 0x14b   :  { %4536 = vst [vmem:[#allocation81_spill] sm:$0xff] %v3490_v47  ;;  %v480_v40 = vmul.f32 %v3261_v39, %v387_v57  ;;  %v723_v47 = vmul.f32 %v3268_v27, %v387_v57  ;;  %v1029_v30 = vmul.f32 %v3297_v1, %v387_v57  ;;  %v582_v17 = vrot.slane %v479_v63, 1 }
 0x14c   :  { %4537 = vst [vmem:[#allocation82_spill] sm:$0xff] %v3496_v8  ;;  %v825_v41 = vrot.slane %v722_v20, 2  ;;  %v992_v8 = vadd.f32 %v960_v25, %v3052_v51  ;;  %v1128_v29 = vrot.slane %v1028_v42, 1  ;;  %v1271_v63 = vmul.f32 %v3308_v13, %v387_v57 }
 0x14d   :  { %4538 = vst [vmem:[#allocation83_spill] sm:$0xff] %v3501_v11  ;;  %v584_v33 = vrot.slane %v480_v40, 1  ;;  %v1270_v11 = vmul.f32 %v3308_v13, %v277_v15  ;;  %v1130_v36 = vrot.slane %v1029_v30, 1  ;;  %v583_v52 = vsel %vm565_vm1, %v4542_v0, %v582_v17 }
 0x14e   :  { %4539 = vst [vmem:[#allocation84_spill] sm:$0xff] %v3505_v61  ;;  %v827_v61 = vrot.slane %v723_v47, 2  ;;  %v826_v2 = vsel %vm808_vm2, %v4543_v18, %v825_v41  ;;  %v684_v20 = vadd.f32 %v583_v52, %v3389_v34  ;;  %v4544_v51 = vrot.slane %v3375_v3, 1 }
 0x14f   :  { %v585_v31 = vsel %vm565_vm1, %v582_v17, %v584_v33  ;;  %v1131_v58 = vsel %vm565_vm1, %v1128_v29, %v1130_v36  ;;  %v1370_v33 = vrot.slane %v1270_v11, 2  ;;  %v1372_v42 = vrot.slane %v1271_v63, 2 }
 0x150   :  { %v685_v40 = vadd.f32 %v585_v31, %v410_v38  ;;  %v828_v47 = vsel %vm808_vm2, %v825_v41, %v827_v61  ;;  %v1129_v25 = vsel %vm565_vm1, %v4544_v51, %v1128_v29  ;;  %v3546_v48 = vadd.f32 %v826_v2, %v684_v20 }
 0x151   :  { %v1233_v0 = vadd.f32 %v1129_v25, %v3392_v5  ;;  %v1234_v30 = vadd.f32 %v1131_v58, %v992_v8  ;;  %v1508_v52 = vmul.f32 %v3334_v9, %v277_v15  ;;  %v4545_v31 = vrot.slane %v3378_v54, 2 }
 0x152   :  { %v3548_v18 = vadd.f32 %v828_v47, %v685_v40  ;;  %v1373_v3 = vsel %vm808_vm2, %v1370_v33, %v1372_v42  ;;  %v1575_v61 = vmul.f32 %v3317_v45, %v277_v15  ;;  %v1576_v29 = vmul.f32 %v3317_v45, %v387_v57 }
 0x153   :  { %v1371_v34 = vsel %vm808_vm2, %v4545_v31, %v1370_v33  ;;  %v3559_v36 = vadd.f32 %v1373_v3, %v1234_v30  ;;  %v1540_v2 = vadd.f32 %v1508_v52, %v3063_v12  ;;  %v1817_v8 = vmul.f32 %v3327_v10, %v277_v15 }
 0x154   :  { %v3557_v5 = vadd.f32 %v1371_v34, %v1233_v0  ;;  %v1673_v11 = vrot.slane %v1575_v61, 1  ;;  %v1675_v38 = vrot.slane %v1576_v29, 1  ;;  %v1818_v54 = vmul.f32 %v3327_v10, %v387_v57 }
 0x155   :  { %v391_v17 = vsel %vm266_vm0, %v288_v23, 0.0  ;;  %v1915_v41 = vrot.slane %v1817_v8, 2  ;;  %v418_v63 = vmul.f32 %v3257_v53, %v3519_v50  ;;  %v491_v20 = vmul.f32 %v3261_v39, %v3519_v50 }
 0x156   :  { %v492_v40 = vmul.f32 %v3261_v39, %v391_v17  ;;  %v4546_v47 = vrot.slane %v3395_v16, 1  ;;  %v1676_v15 = vsel %vm565_vm1, %v1673_v11, %v1675_v38  ;;  %v1917_v51 = vrot.slane %v1818_v54, 2 }
 0x157   :  { %v734_v57 = vmul.f32 %v3268_v27, %v3519_v50  ;;  %v1782_v25 = vadd.f32 %v1676_v15, %v1540_v2  ;;  %v4547_v58 = vrot.slane %v3398_v37, 2  ;;  %v602_v33 = vrot.slane %v491_v20, 1 }
 0x158   :  { %v1674_v12 = vsel %vm565_vm1, %v4546_v47, %v1673_v11  ;;  %v1918_v42 = vsel %vm808_vm2, %v1915_v41, %v1917_v51  ;;  %v604_v30 = vrot.slane %v492_v40, 1  ;;  %v735_v16 = vmul.f32 %v3268_v27, %v391_v17 }
 0x159   :  { %v1781_v23 = vadd.f32 %v1674_v12, %v3415_v60  ;;  %v1916_v0 = vsel %vm808_vm2, %v4547_v58, %v1915_v41  ;;  %v845_v52 = vrot.slane %v734_v57, 2  ;;  %v2024_v34 = vadd.f32 %v1918_v42, %v1782_v25 }
 0x15a   :  { %v4548_v3 = vrot.slane %v3408_v28, 1  ;;  %v968_v60 = vmul.f32 %v3293_v24, %v3519_v50  ;;  %v605_v37 = vsel %vm565_vm1, %v602_v33, %v604_v30  ;;  %v4549_v2 = vrot.slane %v3411_v7, 2 }
 0x15b   :  { %v2023_v31 = vadd.f32 %v1916_v0, %v1781_v23  ;;  %v847_v11 = vrot.slane %v735_v16, 2  ;;  %v2060_v54 = vadd.f32 %v3094_v14, %v2024_v34  ;;  %v693_v41 = vadd.f32 %v605_v37, %v418_v63  ;;  %v224_v37 = vpop.f32.mrf.mxu3 }
 0x15c   :  { %v603_v61 = vsel %vm565_vm1, %v4548_v3, %v602_v33  ;;  %v846_v8 = vsel %vm808_vm2, %v4549_v2, %v845_v52  ;;  %v1000_v28 = vadd.f32 %v968_v60, %v3119_v59  ;;  %v1040_v47 = vmul.f32 %v3297_v1, %v3519_v50 }
 0x15d   :  { %v692_v29 = vadd.f32 %v603_v61, %v3427_v46  ;;  %v2059_v38 = vadd.f32 %v3094_v14, %v2023_v31  ;;  %v848_v20 = vsel %vm808_vm2, %v845_v52, %v847_v11  ;;  %v1041_v46 = vmul.f32 %v3297_v1, %v391_v17  ;;  %2092 = vst [vmem:[#allocation8 + $0x18] sm:$0xff] %v2060_v54  ;;  %v155_v11 = vpop.f32.mrf.mxu0 }
 0x15e   :  { %v3601_v7 = vadd.f32 %v848_v20, %v693_v41  ;;  %v1282_v12 = vmul.f32 %v3308_v13, %v3519_v50  ;;  %v1283_v15 = vmul.f32 %v3308_v13, %v391_v17  ;;  %v1516_v59 = vmul.f32 %v3334_v9, %v3519_v50 }
 0x15f   :  { %v3596_v40 = vadd.f32 %v846_v8, %v692_v29  ;;  %2091 = vst [vmem:[#allocation8 + $0x10] sm:$0xff] %v2059_v38  ;;  %v1148_v63 = vrot.slane %v1040_v47, 1  ;;  %v1150_v51 = vrot.slane %v1041_v46, 1  ;;  %v1587_v57 = vmul.f32 %v3317_v45, %v3519_v50  ;;  %v179_v38 = vpop.f32.mrf.mxu1 }
 0x160   :  { %v1588_v23 = vmul.f32 %v3317_v45, %v391_v17  ;;  %v1390_v25 = vrot.slane %v1282_v12, 2  ;;  %v1392_v58 = vrot.slane %v1283_v15, 2  ;;  %v1548_v0 = vadd.f32 %v1516_v59, %v3172_v56 }
 0x161   :  { %v1829_v33 = vmul.f32 %v3327_v10, %v3519_v50  ;;  %v4550_v42 = vrot.slane %v3419_v49, 1  ;;  %v1151_v16 = vsel %vm565_vm1, %v1148_v63, %v1150_v51  ;;  %v1693_v52 = vrot.slane %v1587_v57, 1 }
 0x162   :  { %v1695_v31 = vrot.slane %v1588_v23, 1  ;;  %v1242_v3 = vadd.f32 %v1151_v16, %v1000_v28  ;;  %v4551_v61 = vrot.slane %v3422_v22, 2  ;;  %v1393_v56 = vsel %vm808_vm2, %v1390_v25, %v1392_v58 }
 0x163   :  { %v1149_v30 = vsel %vm565_vm1, %v4550_v42, %v1148_v63  ;;  %v4552_v50 = vrot.slane %v3435_v44, 1  ;;  %v1830_v2 = vmul.f32 %v3327_v10, %v391_v17  ;;  %v1935_v8 = vrot.slane %v1829_v33, 2 }
 0x164   :  { %v1241_v34 = vadd.f32 %v1149_v30, %v3432_v21  ;;  %v1391_v60 = vsel %vm808_vm2, %v4551_v61, %v1390_v25  ;;  %v1696_v29 = vsel %vm565_vm1, %v1693_v52, %v1695_v31  ;;  %v3630_v54 = vadd.f32 %v1393_v56, %v1242_v3 }
 0x165   :  { %v1694_v49 = vsel %vm565_vm1, %v4552_v50, %v1693_v52  ;;  %v1790_v41 = vadd.f32 %v1696_v29, %v1548_v0  ;;  %v4553_v28 = vrot.slane %v3438_v4, 2  ;;  %v1937_v20 = vrot.slane %v1830_v2, 2 }
 0x166   :  { %v3628_v21 = vadd.f32 %v1391_v60, %v1241_v34  ;;  %v1789_v22 = vadd.f32 %v1694_v49, %v3455_v55  ;;  %v300_v47 = vrot.slane %v3509_v26, 7  ;;  %v225_v46 = vadd.f32 %v3228_v35, %v224_v37  ;;  %v4555_v55 = vld [vmem:[#allocation60_spill] sm:$0xff] }
 0x167   :  { %v1936_v44 = vsel %vm808_vm2, %v4553_v28, %v1935_v8  ;;  %v3639_v12 = vadd.f32 %v3228_v35, %v155_v11  ;;  %v3642_v15 = vadd.f32 %v3228_v35, %v179_v38  ;;  %v4554_v59 = vrot.slane %v3265_v32, 1 }
 0x168   :  { %v2031_v17 = vadd.f32 %v1936_v44, %v1789_v22  ;;  %v4556_v63 = vrot.slane %v4555_v55, 1  ;;  %v1938_v51 = vsel %vm808_vm2, %v1935_v8, %v1937_v20  ;;  %v4557_v26 = vrot.slane %v3231_v19, 7  ;;  %v4559_v22 = vld [vmem:[#allocation74_spill] sm:$0xff]  ;;  %v4561_v20 = vld [vmem:[#allocation75_spill] sm:$0xff]  ;;  %v4563_v55 = vld [vmem:[#allocation77_spill] sm:$0xff] }
 0x169   :  { %v395_v23 = vsel %vm266_vm0, %v300_v47, 0.0  ;;  %v312_v25 = vrot.slane %v225_v46, 7  ;;  %v2032_v58 = vadd.f32 %v1938_v51, %v1790_v41  ;;  %v4558_v50 = vrot.slane %v3447_v43, 1 }
 0x16a   :  { %v3649_v4 = vsel %vm565_vm1, %v4556_v63, %v4554_v59  ;;  %v301_v57 = vsel %vm266_vm0, %v4557_v26, %v300_v47  ;;  %v2067_v0 = vadd.f32 %v3094_v14, %v2031_v17  ;;  %v504_v42 = vmul.f32 %v3261_v39, %v395_v23 }
 0x16b   :  { %v426_v33 = vmul.f32 %v3257_v53, %v301_v57  ;;  %v503_v32 = vmul.f32 %v3261_v39, %v301_v57  ;;  %v746_v30 = vmul.f32 %v3268_v27, %v301_v57  ;;  %v747_v16 = vmul.f32 %v3268_v27, %v395_v23 }
 0x16c   :  { %v976_v19 = vmul.f32 %v3293_v24, %v301_v57  ;;  %v2068_v52 = vadd.f32 %v3094_v14, %v2032_v58  ;;  %2099 = vst [vmem:[#allocation8 + $0x50] sm:$0xff] %v2067_v0  ;;  %v1052_v34 = vmul.f32 %v3297_v1, %v301_v57  ;;  %v1053_v3 = vmul.f32 %v3297_v1, %v395_v23 }
 0x16d   :  { %v622_v31 = vrot.slane %v503_v32, 1  ;;  %v624_v61 = vrot.slane %v504_v42, 1  ;;  %v865_v60 = vrot.slane %v746_v30, 2  ;;  %v867_v56 = vrot.slane %v747_v16, 2  ;;  %v4565_v32 = vld [vmem:[#allocation76_spill] sm:$0xff] }
 0x16e   :  { %v1008_v37 = vadd.f32 %v976_v19, %v3238_v62  ;;  %2100 = vst [vmem:[#allocation8 + $0x58] sm:$0xff] %v2068_v52  ;;  %v1168_v29 = vrot.slane %v1052_v34, 1  ;;  %v1170_v2 = vrot.slane %v1053_v3, 1  ;;  %v1294_v8 = vmul.f32 %v3308_v13, %v301_v57  ;;  %v4567_v3 = vld [vmem:[#allocation72_spill] sm:$0xff] }
 0x16f   :  { %v623_v49 = vsel %vm565_vm1, %v4558_v50, %v622_v31  ;;  %v625_v11 = vsel %vm565_vm1, %v622_v31, %v624_v61  ;;  %v4560_v41 = vrot.slane %v4559_v22, 2  ;;  %v868_v44 = vsel %vm808_vm2, %v865_v60, %v867_v56 }
 0x170   :  { %v700_v38 = vadd.f32 %v623_v49, %v3473_v6  ;;  %v701_v62 = vadd.f32 %v625_v11, %v426_v33  ;;  %v4562_v47 = vrot.slane %v4561_v20, 1  ;;  %v1171_v46 = vsel %vm565_vm1, %v1168_v29, %v1170_v2  ;;  %v4571_v11 = vld [vmem:[#allocation51_spill] sm:$0xff] }
 0x171   :  { %v866_v28 = vsel %vm808_vm2, %v4560_v41, %v865_v60  ;;  %v1295_v17 = vmul.f32 %v3308_v13, %v395_v23  ;;  %v1250_v6 = vadd.f32 %v1171_v46, %v1008_v37  ;;  %v1410_v51 = vrot.slane %v1294_v8, 2 }
 0x172   :  { %v1169_v43 = vsel %vm565_vm1, %v4562_v47, %v1168_v29  ;;  %v3682_v59 = vadd.f32 %v866_v28, %v700_v38  ;;  %v3685_v26 = vadd.f32 %v868_v44, %v701_v62  ;;  %v1524_v0 = vmul.f32 %v3334_v9, %v301_v57  ;;  %v4569_v29 = vld [vmem:[#allocation78_spill] sm:$0xff]  ;;  %v4573_v28 = vld [vmem:[#allocation81_spill] sm:$0xff]  ;;  %v4574_v62 = vld [vmem:[#allocation79_spill] sm:$0xff] }
 0x173   :  { %v1249_v63 = vadd.f32 %v1169_v43, %v4563_v55  ;;  %v1412_v58 = vrot.slane %v1295_v17, 2  ;;  %v1599_v33 = vmul.f32 %v3317_v45, %v301_v57  ;;  %v4566_v42 = vrot.slane %v4565_v32, 2 }
 0x174   :  { %4564 = vst [vmem:[#allocation60_spill] sm:$0xff] %v3685_v26  ;;  %v1600_v16 = vmul.f32 %v3317_v45, %v395_v23  ;;  %v1841_v19 = vmul.f32 %v3327_v10, %v301_v57  ;;  %v1842_v52 = vmul.f32 %v3327_v10, %v395_v23  ;;  %v1556_v61 = vadd.f32 %v1524_v0, %v4567_v3 }
 0x175   :  { %v1411_v30 = vsel %vm808_vm2, %v4566_v42, %v1410_v51  ;;  %v1413_v31 = vsel %vm808_vm2, %v1410_v51, %v1412_v58  ;;  %v1713_v60 = vrot.slane %v1599_v33, 1  ;;  %v4570_v2 = vrot.slane %v4569_v29, 1 }
 0x176   :  { %v3696_v34 = vadd.f32 %v1411_v30, %v1249_v63  ;;  %v3699_v56 = vadd.f32 %v1413_v31, %v1250_v6  ;;  %v1715_v37 = vrot.slane %v1600_v16, 1  ;;  %v1955_v50 = vrot.slane %v1841_v19, 2 }
 0x177   :  { %v1957_v49 = vrot.slane %v1842_v52, 2  ;;  %v1714_v8 = vsel %vm565_vm1, %v4570_v2, %v1713_v60  ;;  %v4572_v57 = vrot.slane %v4571_v11, 7  ;;  %v399_v38 = vsel %vm266_vm0, %v312_v25, 0.0  ;;  %v4576_v52 = vld [vmem:[#allocation56_spill] sm:$0xff] }
 0x178   :  { %4568 = vst [vmem:[#allocation74_spill] sm:$0xff] %v3699_v56  ;;  %v4375_v22 = vrot.slane %v3639_v12, 7  ;;  %v1716_v41 = vsel %vm565_vm1, %v1713_v60, %v1715_v37  ;;  %v1797_v44 = vadd.f32 %v1714_v8, %v4573_v28  ;;  %v4575_v20 = vrot.slane %v4574_v62, 2 }
 0x179   :  { %v313_v23 = vsel %vm266_vm0, %v4572_v57, %v312_v25  ;;  %v1958_v43 = vsel %vm808_vm2, %v1955_v50, %v1957_v49  ;;  %v1798_v46 = vadd.f32 %v1716_v41, %v1556_v61  ;;  %v516_v25 = vmul.f32 %v3261_v39, %v399_v38 }
 0x17a   :  { %v1956_v47 = vsel %vm808_vm2, %v4575_v20, %v1955_v50  ;;  %v434_v17 = vmul.f32 %v3257_v53, %v313_v23  ;;  %v3717_v55 = vmul.f32 %v3261_v39, %v313_v23  ;;  %v3721_v6 = vmul.f32 %v3268_v27, %v313_v23 }
 0x17b   :  { %v2039_v63 = vadd.f32 %v1956_v47, %v1797_v44  ;;  %v759_v51 = vmul.f32 %v3268_v27, %v399_v38  ;;  %v984_v58 = vmul.f32 %v3293_v24, %v313_v23  ;;  %v2040_v0 = vadd.f32 %v1958_v43, %v1798_v46  ;;  %v4578_v43 = vld [vmem:[#allocation73_spill] sm:$0xff] }
 0x17c   :  { %v4379_v33 = vrot.slane %v3717_v55, 1  ;;  %v644_v32 = vrot.slane %v516_v25, 1  ;;  %v3727_v42 = vmul.f32 %v3297_v1, %v313_v23  ;;  %v4378_v16 = vrot.slane %v3721_v6, 2 }
 0x17d   :  { %v2075_v30 = vadd.f32 %v3094_v14, %v2039_v63  ;;  %v887_v19 = vrot.slane %v759_v51, 2  ;;  %v1016_v31 = vadd.f32 %v984_v58, %v4576_v52  ;;  %v2076_v3 = vadd.f32 %v3094_v14, %v2040_v0 }
 0x17e   :  { %v645_v61 = vsel %vm565_vm1, %v4379_v33, %v644_v32  ;;  %v1065_v60 = vmul.f32 %v3297_v1, %v399_v38  ;;  %v4377_v37 = vrot.slane %v3727_v42, 1  ;;  %v3746_v29 = vmul.f32 %v3308_v13, %v313_v23  ;;  %v4583_v32 = vld [vmem:[#allocation82_spill] sm:$0xff]  ;;  %v4592_v33 = vld [vmem:[#allocation57_spill] sm:$0xff] }
 0x17f   :  { %2107 = vst [vmem:[#allocation8 + $0x90] sm:$0xff] %v2075_v30  ;;  %v3738_v50 = vadd.f32 %v645_v61, %v434_v17  ;;  %v3743_v49 = vsel %vm808_vm2, %v4378_v16, %v887_v19  ;;  %v1307_v2 = vmul.f32 %v3308_v13, %v399_v38  ;;  %v1532_v11 = vmul.f32 %v3334_v9, %v313_v23 }
 0x180   :  { %4577 = vst [vmem:[#allocation75_spill] sm:$0xff] %v3743_v49  ;;  %v1190_v8 = vrot.slane %v1065_v60, 1  ;;  %v1611_v57 = vmul.f32 %v3317_v45, %v313_v23  ;;  %v1612_v41 = vmul.f32 %v3317_v45, %v399_v38  ;;  %v4376_v28 = vrot.slane %v3746_v29, 2 }
 0x181   :  { %2108 = vst [vmem:[#allocation8 + $0x98] sm:$0xff] %v2076_v3  ;;  %v1432_v44 = vrot.slane %v1307_v2, 2  ;;  %v1853_v62 = vmul.f32 %v3327_v10, %v313_v23  ;;  %v1854_v20 = vmul.f32 %v3327_v10, %v399_v38  ;;  %v1564_v46 = vadd.f32 %v1532_v11, %v4578_v43  ;;  %v4581_v23 = vld [vmem:[#allocation52_spill] sm:$0xff]  ;;  %v4586_v2 = vld [vmem:[#allocation83_spill] sm:$0xff] }
 0x182   :  { %v1191_v47 = vsel %vm565_vm1, %v4377_v37, %v1190_v8  ;;  %v1733_v17 = vrot.slane %v1611_v57, 1  ;;  %v1735_v25 = vrot.slane %v1612_v41, 1  ;;  %v3768_v38 = vmul.f32 %v3334_v9, %v4581_v23  ;;  %v4585_v3 = vld [vmem:[#allocation84_spill] sm:$0xff] }
 0x183   :  { %v3759_v63 = vadd.f32 %v1191_v47, %v1016_v31  ;;  %v3764_v51 = vsel %vm808_vm2, %v4376_v28, %v1432_v44  ;;  %v1975_v58 = vrot.slane %v1853_v62, 2  ;;  %v1977_v0 = vrot.slane %v1854_v20, 2  ;;  %v4588_v47 = vld [vmem:[#allocation80_spill] sm:$0xff] }
 0x184   :  { %4580 = vst [vmem:[#allocation76_spill] sm:$0xff] %v3764_v51  ;;  %v4584_v30 = vrot.slane %v4583_v32, 1  ;;  %v1736_v52 = vsel %vm565_vm1, %v1733_v17, %v1735_v25  ;;  %v371_v31 = vsel %vm266_vm0, 0.0, %v4375_v22  ;;  %v4587_v8 = vrot.slane %v4586_v2, 2 }
 0x185   :  { %4579 = vst [vmem:[#allocation77_spill] sm:$0xff] %v3759_v63  ;;  %v1806_v60 = vadd.f32 %v1736_v52, %v1564_v46  ;;  %v4374_v57 = vrot.slane %v3642_v15, 7  ;;  %v1978_v41 = vsel %vm808_vm2, %v1975_v58, %v1977_v0  ;;  %v3784_v44 = vmul.f32 %v3261_v39, %v371_v31  ;;  %v158_v63 = vpop.f32.mrf.mxu0 }
 0x186   :  { %4582 = vst [vmem:[#allocation72_spill] sm:$0xff] %v3768_v38  ;;  %v1734_v19 = vsel %vm565_vm1, %v4584_v30, %v1733_v17  ;;  %v1976_v11 = vsel %vm808_vm2, %v4587_v8, %v1975_v58  ;;  %v3787_v62 = vmul.f32 %v3268_v27, %v371_v31  ;;  %v961_v20 = vmul.f32 %v3293_v24, %v371_v31 }
 0x187   :  { %v1805_v61 = vadd.f32 %v1734_v19, %v4585_v3  ;;  %v514_v43 = vmul.f32 %v3261_v39, %v4588_v47  ;;  %v2048_v17 = vadd.f32 %v1978_v41, %v1806_v60  ;;  %v3793_v25 = vmul.f32 %v3297_v1, %v371_v31 }
 0x188   :  { %v3797_v23 = vmul.f32 %v3297_v1, %v4588_v47  ;;  %v3800_v58 = vmul.f32 %v3257_v53, %v371_v31  ;;  %v3803_v0 = vmul.f32 %v3308_v13, %v371_v31  ;;  %v1509_v32 = vmul.f32 %v3334_v9, %v371_v31 }
 0x189   :  { %v2047_v46 = vadd.f32 %v1976_v11, %v1805_v61  ;;  %v2084_v19 = vadd.f32 %v3094_v14, %v2048_v17  ;;  %v3811_v61 = vadd.f32 %v961_v20, %v3546_v48  ;;  %v3814_v60 = vmul.f32 %v3317_v45, %v371_v31 }
 0x18a   :  { %v3817_v2 = vmul.f32 %v3327_v10, %v371_v31  ;;  %v375_v8 = vsel %vm266_vm0, 0.0, %v4374_v57  ;;  %v3832_v31 = vadd.f32 %v1509_v32, %v3557_v5  ;;  %v227_v57 = vpop.f32.mrf.mxu3  ;;  %v4593_v38 = vrot.slane %v4592_v33, 2 }
 0x18b   :  { %v2083_v30 = vadd.f32 %v3094_v14, %v2047_v46  ;;  %v3824_v11 = vmul.f32 %v3261_v39, %v375_v8  ;;  %v3827_v41 = vmul.f32 %v3268_v27, %v375_v8  ;;  %v969_v48 = vmul.f32 %v3293_v24, %v375_v8  ;;  %2116 = vst [vmem:[#allocation8 + $0xd8] sm:$0xff] %v2084_v19 }
 0x18c   :  { %v3835_v46 = vmul.f32 %v3297_v1, %v375_v8  ;;  %v3838_v17 = vmul.f32 %v3308_v13, %v375_v8  ;;  %v3843_v52 = vmul.f32 %v3257_v53, %v375_v8  ;;  %v1517_v19 = vmul.f32 %v3334_v9, %v375_v8 }
 0x18d   :  { %2115 = vst [vmem:[#allocation8 + $0xd0] sm:$0xff] %v2083_v30  ;;  %v203_v30 = vpop.f32.mrf.mxu2  ;;  %v3849_v20 = vadd.f32 %v969_v48, %v3596_v40  ;;  %v3852_v22 = vmul.f32 %v3317_v45, %v375_v8  ;;  %v3856_v14 = vmul.f32 %v3327_v10, %v375_v8  ;;  %v3862_v37 = vadd.f32 %v3228_v35, %v227_v57  ;;  %v4591_v48 = vld [vmem:[#allocation61_spill] sm:$0xff]  ;;  %v4594_v57 = vld [vmem:[#allocation62_spill] sm:$0xff] }
 0x18e   :  { %v3859_v3 = vadd.f32 %v3228_v35, %v203_v30  ;;  %v3866_v32 = vadd.f32 %v1517_v19, %v3628_v21  ;;  %v641_v40 = vrot.slane %v514_v43, 1  ;;  %v706_v16 = vadd.f32 %v3649_v4, %v4591_v48 }
 0x18f   :  { %4590 = vst [vmem:[#allocation51_spill] sm:$0xff] %v3862_v37  ;;  %v757_v30 = vmul.f32 %v3268_v27, %v4588_v47  ;;  %v4595_v56 = vrot.slane %v4594_v57, 2  ;;  %v433_v43 = vmul.f32 %v3257_v53, %v4588_v47  ;;  %v4596_v4 = vrot.slane %v3717_v55, 1 }
 0x190   :  { %4589 = vst [vmem:[#allocation78_spill] sm:$0xff] %v3859_v3  ;;  %v4380_v28 = vrot.slane %v3859_v3, 7  ;;  %v983_v57 = vmul.f32 %v3293_v24, %v4588_v47 }
 0x191   :  { %v881_v5 = vsel %vm808_vm2, %v4595_v56, %v4593_v38  ;;  %v643_v19 = vsel %vm565_vm1, %v641_v40, %v4596_v4  ;;  %v1187_v56 = vrot.slane %v3797_v23, 1  ;;  %v884_v23 = vrot.slane %v757_v30, 2 }
 0x192   :  { %v949_v48 = vadd.f32 %v881_v5, %v706_v16  ;;  %v379_v33 = vsel %vm266_vm0, 0.0, %v4380_v28  ;;  %v4598_v16 = vrot.slane %v3862_v37, 7  ;;  %v708_v28 = vadd.f32 %v643_v19, %v433_v43 }
 0x193   :  { %v3893_v38 = vmul.f32 %v3261_v39, %v379_v33  ;;  %v3896_v21 = vmul.f32 %v3268_v27, %v379_v33  ;;  %v977_v55 = vmul.f32 %v3293_v24, %v379_v33  ;;  %v3903_v40 = vmul.f32 %v3297_v1, %v379_v33 }
 0x194   :  { %v383_v5 = vsel %vm266_vm0, 0.0, %v4598_v16  ;;  %v3906_v4 = vmul.f32 %v3308_v13, %v379_v33  ;;  %v3909_v8 = vmul.f32 %v3257_v53, %v379_v33  ;;  %v1525_v3 = vmul.f32 %v3334_v9, %v379_v33 }
 0x195   :  { %4597 = vst [vmem:[#allocation81_spill] sm:$0xff] %v3893_v38  ;;  %v3914_v51 = vmul.f32 %v3317_v45, %v379_v33  ;;  %v3918_v37 = vadd.f32 %v977_v55, %v3682_v59  ;;  %v3922_v43 = vmul.f32 %v3327_v10, %v379_v33  ;;  %v4601_v19 = vrot.slane %v3721_v6, 2 }
 0x196   :  { %4599 = vst [vmem:[#allocation79_spill] sm:$0xff] %v3909_v8  ;;  %v985_v8 = vmul.f32 %v3293_v24, %v383_v5  ;;  %v1015_v38 = vadd.f32 %v983_v57, %v949_v48  ;;  %v3930_v16 = vmul.f32 %v3297_v1, %v383_v5  ;;  %v4603_v59 = vrot.slane %v3727_v42, 1  ;;  %v4609_v48 = vld [vmem:[#allocation21_spill] sm:$0xff] }
 0x197   :  { %4600 = vst [vmem:[#allocation56_spill] sm:$0xff] %v3922_v43  ;;  %v886_v26 = vsel %vm808_vm2, %v884_v23, %v4601_v19  ;;  %v1305_v33 = vmul.f32 %v3308_v13, %v4588_v47  ;;  %v3938_v30 = vadd.f32 %v1525_v3, %v3696_v34  ;;  %v3941_v23 = vmul.f32 %v3308_v13, %v383_v5 }
 0x198   :  { %v951_v49 = vadd.f32 %v886_v26, %v708_v28  ;;  %4602 = vst [vmem:[#allocation73_spill] sm:$0xff] %v3930_v16  ;;  %v1189_v55 = vsel %vm565_vm1, %v1187_v56, %v4603_v59  ;;  %v3944_v26 = vmul.f32 %v3317_v45, %v383_v5  ;;  %v182_v28 = vpop.f32.mrf.mxu1  ;;  %v1533_v56 = vmul.f32 %v3334_v9, %v383_v5 }
 0x199   :  { %v1257_v6 = vadd.f32 %v1189_v55, %v1015_v38  ;;  %4604 = vst [vmem:[#allocation52_spill] sm:$0xff] %v3941_v23  ;;  %v1429_v57 = vrot.slane %v1305_v33, 2  ;;  %v3953_v3 = vmul.f32 %v3327_v10, %v383_v5  ;;  %v159_v38 = vadd.f32 %v3228_v35, %v158_v63 }
 0x19a   :  { %4605 = vst [vmem:[#allocation82_spill] sm:$0xff] %v3944_v26  ;;  %v3949_v47 = vadd.f32 %v985_v8, %v951_v49  ;;  %v4608_v19 = vrot.slane %v3746_v29, 2  ;;  %v3962_v33 = vadd.f32 %v3228_v35, %v182_v28  ;;  %v964_v34 = vmul.f32 %v3293_v24, %v4609_v48  ;;  %v4610_v29 = vld [vmem:[#allocation26_spill] sm:$0xff]  ;;  %v4611_v35 = vld [vmem:[#allocation31_spill] sm:$0xff] }
 0x19b   :  { %4607 = vst [vmem:[#allocation83_spill] sm:$0xff] %v3953_v3  ;;  %v279_v8 = vrot.slane %v159_v38, 7  ;;  %v1512_v5 = vmul.f32 %v3334_v9, %v4609_v48  ;;  %v4613_v38 = vrot.slane %v3639_v12, 7  ;;  %v3989_v42 = vmul.f32 %v3334_v9, %v4611_v35 }
 0x19c   :  { %4606 = vst [vmem:[#allocation84_spill] sm:$0xff] %v3949_v47  ;;  %v1431_v59 = vsel %vm808_vm2, %v1429_v57, %v4608_v19  ;;  %v3971_v57 = vmul.f32 %v3293_v24, %v4610_v29  ;;  %v3975_v19 = vmul.f32 %v3334_v9, %v4610_v29  ;;  %v4614_v16 = vrot.slane %v3784_v44, 1 }
 0x19d   :  { %v1499_v49 = vadd.f32 %v1431_v59, %v1257_v6  ;;  %v3979_v6 = vmul.f32 %v3293_v24, %v4611_v35  ;;  %v280_v48 = vsel %vm266_vm0, %v4613_v38, %v279_v8  ;;  %v388_v59 = vsel %vm266_vm0, %v279_v8, 0.0 }
 0x19e   :  { %v412_v55 = vmul.f32 %v3257_v53, %v280_v48  ;;  %v482_v29 = vmul.f32 %v3261_v39, %v280_v48  ;;  %v483_v63 = vmul.f32 %v3261_v39, %v388_v59  ;;  %v725_v3 = vmul.f32 %v3268_v27, %v280_v48 }
 0x19f   :  { %v3981_v28 = vadd.f32 %v1533_v56, %v1499_v49  ;;  %v726_v56 = vmul.f32 %v3268_v27, %v388_v59  ;;  %v962_v12 = vmul.f32 %v3293_v24, %v280_v48  ;;  %v1031_v49 = vmul.f32 %v3297_v1, %v280_v48 }
 0x1a0   :  { %v1032_v8 = vmul.f32 %v3297_v1, %v388_v59  ;;  %v587_v38 = vrot.slane %v482_v29, 1  ;;  %v830_v35 = vrot.slane %v725_v3, 2  ;;  %v1273_v26 = vmul.f32 %v3308_v13, %v280_v48 }
 0x1a1   :  { %4612 = vst [vmem:[#allocation80_spill] sm:$0xff] %v3981_v28  ;;  %v589_v28 = vrot.slane %v483_v63, 1  ;;  %v832_v53 = vrot.slane %v726_v56, 2  ;;  %v994_v23 = vadd.f32 %v962_v12, %v3548_v18  ;;  %v1133_v47 = vrot.slane %v1031_v49, 1 }
 0x1a2   :  { %v1135_v39 = vrot.slane %v1032_v8, 1  ;;  %v588_v27 = vsel %vm565_vm1, %v4614_v16, %v587_v38  ;;  %v4615_v43 = vrot.slane %v3787_v62, 2  ;;  %v1274_v63 = vmul.f32 %v3308_v13, %v388_v59 }
 0x1a3   :  { %v590_v24 = vsel %vm565_vm1, %v587_v38, %v589_v28  ;;  %v686_v3 = vadd.f32 %v588_v27, %v3800_v58  ;;  %v833_v56 = vsel %vm808_vm2, %v830_v35, %v832_v53  ;;  %v4616_v18 = vrot.slane %v3793_v25, 1 }
 0x1a4   :  { %v831_v1 = vsel %vm808_vm2, %v4615_v43, %v830_v35  ;;  %v687_v29 = vadd.f32 %v590_v24, %v412_v55  ;;  %v1136_v44 = vsel %vm565_vm1, %v1133_v47, %v1135_v39  ;;  %v1375_v28 = vrot.slane %v1273_v26, 2 }
 0x1a5   :  { %v1134_v12 = vsel %vm565_vm1, %v4616_v18, %v1133_v47  ;;  %v1377_v49 = vrot.slane %v1274_v63, 2  ;;  %v929_v62 = vadd.f32 %v831_v1, %v686_v3  ;;  %v1236_v43 = vadd.f32 %v1136_v44, %v994_v23  ;;  %v4618_v47 = vld [vmem:[#allocation15_spill] sm:$0xff] }
 0x1a6   :  { %v1235_v16 = vadd.f32 %v1134_v12, %v3811_v61  ;;  %v930_v8 = vadd.f32 %v833_v56, %v687_v29  ;;  %v1510_v13 = vmul.f32 %v3334_v9, %v280_v48  ;;  %v4617_v58 = vrot.slane %v3803_v0, 2  ;;  %v4619_v0 = vld [vmem:[#allocation22_spill] sm:$0xff]  ;;  %v4620_v63 = vld [vmem:[#allocation23_spill] sm:$0xff]  ;;  %v4621_v29 = vld [vmem:[#allocation16_spill] sm:$0xff] }
 0x1a7   :  { %v1378_v38 = vsel %vm808_vm2, %v1375_v28, %v1377_v49  ;;  %v1578_v25 = vmul.f32 %v3317_v45, %v280_v48  ;;  %v1579_v35 = vmul.f32 %v3317_v45, %v388_v59  ;;  %v995_v53 = vadd.f32 %v4618_v47, %v929_v62  ;;  %v4624_v49 = vld [vmem:[#allocation25_spill] sm:$0xff] }
 0x1a8   :  { %v1376_v55 = vsel %vm808_vm2, %v4617_v58, %v1375_v28  ;;  %v996_v61 = vadd.f32 %v964_v34, %v930_v8  ;;  %v1478_v39 = vadd.f32 %v1378_v38, %v1236_v43  ;;  %v1542_v27 = vadd.f32 %v1510_v13, %v3559_v36  ;;  %v4625_v43 = vld [vmem:[#allocation27_spill] sm:$0xff]  ;;  %v4626_v58 = vld [vmem:[#allocation28_spill] sm:$0xff] }
 0x1a9   :  { %v1477_v26 = vadd.f32 %v1376_v55, %v1235_v16  ;;  %v1678_v23 = vrot.slane %v1578_v25, 1  ;;  %v1680_v24 = vrot.slane %v1579_v35, 1  ;;  %v1820_v9 = vmul.f32 %v3327_v10, %v280_v48  ;;  %v4623_v16 = vld [vmem:[#allocation24_spill] sm:$0xff]  ;;  %v4628_v25 = vld [vmem:[#allocation50_spill] sm:$0xff] }
 0x1aa   :  { %v1237_v1 = vadd.f32 %v4619_v0, %v995_v53  ;;  %v1238_v3 = vadd.f32 %v4620_v63, %v996_v61  ;;  %v1544_v18 = vadd.f32 %v1512_v5, %v1478_v39  ;;  %v4622_v45 = vrot.slane %v3814_v60, 1  ;;  %v4632_v39 = vld [vmem:[#allocation29_spill] sm:$0xff]  ;;  %v4635_v0 = vld [vmem:[#allocation64_spill] sm:$0xff] }
 0x1ab   :  { %v1543_v56 = vadd.f32 %v4621_v29, %v1477_v26  ;;  %v1681_v34 = vsel %vm565_vm1, %v1678_v23, %v1680_v24  ;;  %v1821_v44 = vmul.f32 %v3327_v10, %v388_v59  ;;  %v1920_v36 = vrot.slane %v1820_v9, 2  ;;  %v4629_v10 = vld [vmem:[#allocation68_spill] sm:$0xff]  ;;  %v4636_v63 = vld [vmem:[#allocation65_spill] sm:$0xff] }
 0x1ac   :  { %v1679_v12 = vsel %vm565_vm1, %v4622_v45, %v1678_v23  ;;  %v1479_v28 = vadd.f32 %v4623_v16, %v1237_v1  ;;  %v1480_v48 = vadd.f32 %v4624_v49, %v1238_v3  ;;  %v1784_v8 = vadd.f32 %v1681_v34, %v1542_v27  ;;  %v4073_v34 = vld [vmem:[#allocation7 + $0x1] ss:$0 sm:$0xff] }
 0x1ad   :  { %v1783_v62 = vadd.f32 %v1679_v12, %v3832_v31  ;;  %v1785_v13 = vadd.f32 %v4625_v43, %v1543_v56  ;;  %v1786_v5 = vadd.f32 %v4626_v58, %v1544_v18  ;;  %v4627_v60 = vrot.slane %v3817_v2, 2  ;;  %v4633_v2 = vld [vmem:[#allocation30_spill] sm:$0xff] }
 0x1ae   :  { %v1922_v38 = vrot.slane %v1821_v44, 2  ;;  %v1545_v35 = vadd.f32 %v4628_v25, %v1479_v28  ;;  %v1546_v59 = vadd.f32 %v4629_v10, %v1480_v48  ;;  %v4630_v53 = vrot.slane %v3962_v33, 7  ;;  %v4069_v33 = vld [vmem:[#allocation7] ss:$0 sm:$0xff]  ;;  %v4638_v28 = vld [vmem:[#allocation67_spill] sm:$0xff] }
 0x1af   :  { %v1921_v55 = vsel %vm808_vm2, %v4627_v60, %v1920_v36  ;;  %v4631_v61 = vrot.slane %v3642_v15, 7  ;;  %v2027_v27 = vadd.f32 %v4632_v39, %v1785_v13  ;;  %v2028_v23 = vadd.f32 %v4633_v2, %v1786_v5  ;;  %v4064_v15 = vld [vmem:[%s4332_s4] ss:$0 sm:$0xff]  ;;  %v4082_v43 = vld [vmem:[#allocation7 + $0x2] ss:$0 sm:$0xff] }
 0x1b0   :  { %v2025_v47 = vadd.f32 %v1921_v55, %v1783_v62  ;;  %v1923_v26 = vsel %vm808_vm2, %v1920_v36, %v1922_v38  ;;  %v4634_v24 = vmov %v4630_v53  ;;  %v1787_v1 = vadd.f32 %v4635_v0, %v1545_v35  ;;  %v4637_v36 = vld [vmem:[#allocation66_spill] sm:$0xff] }
 0x1b1   :  { %v4049_v31 = vsel %vm266_vm0, %v4631_v61, %v4630_v53  ;;  %v4057_v9 = vsel %vm266_vm0, %v4634_v24, 0.0  ;;  %v1788_v3 = vadd.f32 %v4636_v63, %v1546_v59  ;;  %v2026_v29 = vadd.f32 %v1923_v26, %v1784_v8  ;;  %v4088_v5 = vld [vmem:[#allocation7 + $0x3] ss:$0 sm:$0xff]  ;;  %v4094_v35 = vld [vmem:[#allocation7 + $0x4] ss:$0 sm:$0xff] }
 0x1b2   :  { %v2061_v56 = vadd.f32 %v4064_v15, %v2025_v47  ;;  %v2063_v18 = vadd.f32 %v4064_v15, %v2027_v27  ;;  %v2064_v45 = vadd.f32 %v4064_v15, %v2028_v23  ;;  %v420_v12 = vmul.f32 %v4069_v33, %v4049_v31  ;;  %v4110_v63 = vld [vmem:[#allocation7 + $0x5] ss:$0 sm:$0xff] }
 0x1b3   :  { %v494_v44 = vmul.f32 %v4073_v34, %v4049_v31  ;;  %v2029_v16 = vadd.f32 %v4637_v36, %v1787_v1  ;;  %v2030_v49 = vadd.f32 %v4638_v28, %v1788_v3  ;;  %v2062_v48 = vadd.f32 %v4064_v15, %v2026_v29 }
 0x1b4   :  { %2093 = vst [vmem:[#allocation8 + $0x20] sm:$0xff] %v2061_v56  ;;  %v495_v62 = vmul.f32 %v4073_v34, %v4057_v9  ;;  %v737_v13 = vmul.f32 %v4082_v43, %v4049_v31  ;;  %v738_v58 = vmul.f32 %v4082_v43, %v4057_v9  ;;  %v970_v60 = vmul.f32 %v4088_v5, %v4049_v31 }
 0x1b5   :  { %2095 = vst [vmem:[#allocation8 + $0x30] sm:$0xff] %v2063_v18  ;;  %v607_v8 = vrot.slane %v494_v44, 1  ;;  %v2065_v55 = vadd.f32 %v4064_v15, %v2029_v16  ;;  %v2066_v38 = vadd.f32 %v4064_v15, %v2030_v49  ;;  %v1043_v10 = vmul.f32 %v4094_v35, %v4049_v31  ;;  %v4120_v44 = vld [vmem:[#allocation7 + $0x6] ss:$0 sm:$0xff]  ;;  %v4642_v16 = vld [vmem:[#allocation17_spill] sm:$0xff] }
 0x1b6   :  { %2094 = vst [vmem:[#allocation8 + $0x28] sm:$0xff] %v2062_v48  ;;  %v609_v25 = vrot.slane %v495_v62, 1  ;;  %v4639_v59 = vrot.slane %v3824_v11, 1  ;;  %v850_v53 = vrot.slane %v737_v13, 2  ;;  %v852_v61 = vrot.slane %v738_v58, 2 }
 0x1b7   :  { %2096 = vst [vmem:[#allocation8 + $0x38] sm:$0xff] %v2064_v45  ;;  %v1002_v26 = vadd.f32 %v970_v60, %v3601_v7  ;;  %v1044_v2 = vmul.f32 %v4094_v35, %v4057_v9  ;;  %v1153_v23 = vrot.slane %v1043_v10, 1  ;;  %v4640_v0 = vrot.slane %v3827_v41, 2  ;;  %v4126_v48 = vld [vmem:[#allocation7 + $0x7] ss:$0 sm:$0xff] }
 0x1b8   :  { %v608_v47 = vsel %vm565_vm1, %v4639_v59, %v607_v8  ;;  %2097 = vst [vmem:[#allocation8 + $0x40] sm:$0xff] %v2065_v55  ;;  %v610_v39 = vsel %vm565_vm1, %v607_v8, %v609_v25  ;;  %v853_v1 = vsel %vm808_vm2, %v850_v53, %v852_v61  ;;  %v1285_v7 = vmul.f32 %v4110_v63, %v4049_v31  ;;  %v4644_v55 = vld [vmem:[#allocation32_spill] sm:$0xff] }
 0x1b9   :  { %v694_v27 = vadd.f32 %v608_v47, %v3843_v52  ;;  %2098 = vst [vmem:[#allocation8 + $0x48] sm:$0xff] %v2066_v38  ;;  %v695_v24 = vadd.f32 %v610_v39, %v420_v12  ;;  %v851_v11 = vsel %vm808_vm2, %v4640_v0, %v850_v53  ;;  %v4641_v52 = vrot.slane %v3835_v46, 1  ;;  %v4645_v47 = vld [vmem:[#allocation33_spill] sm:$0xff]  ;;  %v4648_v0 = vld [vmem:[#allocation35_spill] sm:$0xff] }
 0x1ba   :  { %v1155_v56 = vrot.slane %v1044_v2, 1  ;;  %v1286_v18 = vmul.f32 %v4110_v63, %v4057_v9  ;;  %v1395_v12 = vrot.slane %v1285_v7, 2  ;;  %v1518_v36 = vmul.f32 %v4120_v44, %v4049_v31 }
 0x1bb   :  { %v937_v3 = vadd.f32 %v851_v11, %v694_v27  ;;  %v1154_v29 = vsel %vm565_vm1, %v4641_v52, %v1153_v23  ;;  %v938_v45 = vadd.f32 %v853_v1, %v695_v24  ;;  %v1590_v62 = vmul.f32 %v4126_v48, %v4049_v31 }
 0x1bc   :  { %v1243_v41 = vadd.f32 %v1154_v29, %v3849_v20  ;;  %v1156_v49 = vsel %vm565_vm1, %v1153_v23, %v1155_v56  ;;  %v1397_v46 = vrot.slane %v1286_v18, 2  ;;  %v4643_v20 = vrot.slane %v3838_v17, 2  ;;  %v4650_v29 = vld [vmem:[#allocation58_spill] sm:$0xff] }
 0x1bd   :  { %v1003_v28 = vadd.f32 %v4642_v16, %v937_v3  ;;  %v1004_v8 = vadd.f32 %v3971_v57, %v938_v45  ;;  %v1244_v13 = vadd.f32 %v1156_v49, %v1002_v26  ;;  %v1550_v60 = vadd.f32 %v1518_v36, %v3630_v54  ;;  %v4140_v57 = vld [vmem:[#allocation7 + $0x8] ss:$0 sm:$0xff]  ;;  %v4646_v26 = vld [vmem:[#allocation34_spill] sm:$0xff]  ;;  %v4651_v45 = vld [vmem:[#allocation36_spill] sm:$0xff]  ;;  %v230_v36 = vpop.f32.mrf.mxu3 }
 0x1be   :  { %v1396_v58 = vsel %vm808_vm2, %v4643_v20, %v1395_v12  ;;  %v1398_v25 = vsel %vm808_vm2, %v1395_v12, %v1397_v46  ;;  %v1591_v59 = vmul.f32 %v4126_v48, %v4057_v9  ;;  %v1698_v39 = vrot.slane %v1590_v62, 1  ;;  %v4647_v54 = vld [vmem:[#allocation18_spill] sm:$0xff]  ;;  %v206_v12 = vpop.f32.mrf.mxu2  ;;  %v4653_v49 = vld [vmem:[#allocation37_spill] sm:$0xff] }
 0x1bf   :  { %v1245_v38 = vadd.f32 %v4644_v55, %v1003_v28  ;;  %v1485_v10 = vadd.f32 %v1396_v58, %v1243_v41  ;;  %v1246_v53 = vadd.f32 %v4645_v47, %v1004_v8  ;;  %v1486_v61 = vadd.f32 %v1398_v25, %v1244_v13  ;;  %v4655_v62 = vld [vmem:[#allocation53_spill] sm:$0xff]  ;;  %v4656_v58 = vld [vmem:[#allocation38_spill] sm:$0xff]  ;;  %v4658_v25 = vld [vmem:[#allocation39_spill] sm:$0xff] }
 0x1c0   :  { %v1832_v17 = vmul.f32 %v4140_v57, %v4049_v31  ;;  %v1700_v23 = vrot.slane %v1591_v59, 1  ;;  %v1833_v24 = vmul.f32 %v4140_v57, %v4057_v9  ;;  %v4649_v7 = vrot.slane %v3852_v22, 1  ;;  %v4652_v9 = vld [vmem:[#allocation54_spill] sm:$0xff] }
 0x1c1   :  { %v1487_v27 = vadd.f32 %v4646_v26, %v1245_v38  ;;  %v1551_v2 = vadd.f32 %v4647_v54, %v1485_v10  ;;  %v1488_v11 = vadd.f32 %v4648_v0, %v1246_v53  ;;  %v1552_v1 = vadd.f32 %v3975_v19, %v1486_v61  ;;  %v4659_v53 = vld [vmem:[#allocation59_spill] sm:$0xff] }
 0x1c2   :  { %v1699_v3 = vsel %vm565_vm1, %v4649_v7, %v1698_v39  ;;  %v1940_v52 = vrot.slane %v1832_v17, 2  ;;  %v1701_v31 = vsel %vm565_vm1, %v1698_v39, %v1700_v23  ;;  %v4654_v22 = vrot.slane %v3856_v14, 2  ;;  %v4662_v7 = vld [vmem:[#allocation77_spill] sm:$0xff] }
 0x1c3   :  { %v1553_v56 = vadd.f32 %v4650_v29, %v1487_v27  ;;  %v1791_v18 = vadd.f32 %v1699_v3, %v3866_v32  ;;  %v1793_v41 = vadd.f32 %v4651_v45, %v1551_v2  ;;  %v1554_v16 = vadd.f32 %v4652_v9, %v1488_v11  ;;  %v4657_v32 = vld [vmem:[#allocation49_spill] sm:$0xff]  ;;  %v4660_v27 = vld [vmem:[#allocation55_spill] sm:$0xff]  ;;  %v4663_v3 = vld [vmem:[#allocation76_spill] sm:$0xff] }
 0x1c4   :  { %v1792_v28 = vadd.f32 %v1701_v31, %v1550_v60  ;;  %v1794_v19 = vadd.f32 %v4653_v49, %v1552_v1  ;;  %v1941_v46 = vsel %vm808_vm2, %v4654_v22, %v1940_v52  ;;  %v1942_v13 = vrot.slane %v1833_v24, 2  ;;  %v2227_v60 = vld [vmem:[%s4330_s2] ss:$0 sm:$0xff]  ;;  %v4661_v11 = vld [vmem:[#allocation75_spill] sm:$0xff]  ;;  %s2336_s2 = smov [#allocation8]  }
 0x1c5   :  { %v1795_v8 = vadd.f32 %v4655_v62, %v1553_v56  ;;  %v2033_v20 = vadd.f32 %v1941_v46, %v1791_v18  ;;  %v2035_v55 = vadd.f32 %v4656_v58, %v1793_v41  ;;  %v1796_v38 = vadd.f32 %v4657_v32, %v1554_v16  ;;  %v4664_v31 = vld [vmem:[#allocation78_spill] sm:$0xff]  ;;  %s2125_s16 = sshll.u32 %s2336_s2, 4  ;;  %s2126_s16 = int_to_ptr.vmem [resolvable:$true] %s2125_s16 }
 0x1c6   :  { %v2036_v10 = vadd.f32 %v4658_v25, %v1794_v19  ;;  %v207_v59 = vadd.f32 %v2227_v60, %v206_v12  ;;  %v4169_v47 = vadd.f32 %v2227_v60, %v230_v36  ;;  %v1943_v14 = vsel %vm808_vm2, %v1940_v52, %v1942_v13 }
 0x1c7   :  { %v2037_v61 = vadd.f32 %v4659_v53, %v1795_v8  ;;  %v2069_v39 = vadd.f32 %v4064_v15, %v2033_v20  ;;  %v2071_v17 = vadd.f32 %v4064_v15, %v2035_v55  ;;  %v2034_v26 = vadd.f32 %v1943_v14, %v1792_v28  ;;  %v4667_v55 = vld [vmem:[#allocation81_spill] sm:$0xff] }
 0x1c8   :  { %v2038_v54 = vadd.f32 %v4660_v27, %v1796_v38  ;;  %v2072_v2 = vadd.f32 %v4064_v15, %v2036_v10  ;;  %v303_v23 = vrot.slane %v207_v59, 7  ;;  %v315_v0 = vrot.slane %v4169_v47, 7  ;;  %v4670_v59 = vld [vmem:[#allocation79_spill] sm:$0xff] }
 0x1c9   :  { %v2073_v24 = vadd.f32 %v4064_v15, %v2037_v61  ;;  %2101 = vst [vmem:[#allocation8 + $0x60] sm:$0xff] %v2069_v39  ;;  %v4181_v1 = vadd.f32 %v4661_v11, %v3738_v50  ;;  %v4185_v52 = vadd.f32 %v4663_v3, %v4662_v7  ;;  %v2070_v29 = vadd.f32 %v4064_v15, %v2034_v26  ;;  %v4694_v47 = vld [vmem:[#allocation71_spill] sm:$0xff] }
 0x1ca   :  { %v2074_v56 = vadd.f32 %v4064_v15, %v2038_v54  ;;  %2103 = vst [vmem:[#allocation8 + $0x70] sm:$0xff] %v2071_v17  ;;  %v4665_v18 = vrot.slane %v4664_v31, 7  ;;  %v396_v41 = vsel %vm266_vm0, %v303_v23, 0.0  ;;  %v4669_v25 = vrot.slane %v3896_v21, 2  ;;  %v4673_v31 = vld [vmem:[#allocation19_spill] sm:$0xff] }
 0x1cb   :  { %2104 = vst [vmem:[#allocation8 + $0x78] sm:$0xff] %v2072_v2  ;;  %v507_v36 = vmul.f32 %v4073_v34, %v396_v41  ;;  %v750_v16 = vmul.f32 %v4082_v43, %v396_v41  ;;  %v1056_v19 = vmul.f32 %v4094_v35, %v396_v41  ;;  %v1298_v60 = vmul.f32 %v4110_v63, %v396_v41 }
 0x1cc   :  { %v304_v45 = vsel %vm266_vm0, %v4665_v18, %v303_v23  ;;  %2102 = vst [vmem:[#allocation8 + $0x68] sm:$0xff] %v2070_v29  ;;  %v4671_v39 = vrot.slane %v3903_v40, 1  ;;  %v4672_v7 = vrot.slane %v3906_v4, 2 }
 0x1cd   :  { %v428_v12 = vmul.f32 %v4069_v33, %v304_v45  ;;  %v506_v50 = vmul.f32 %v4073_v34, %v304_v45  ;;  %v749_v9 = vmul.f32 %v4082_v43, %v304_v45  ;;  %v978_v28 = vmul.f32 %v4088_v5, %v304_v45  ;;  %2105 = vst [vmem:[#allocation8 + $0x80] sm:$0xff] %v2073_v24  ;;  %v4666_v34 = vld [vmem:[#allocation60_spill] sm:$0xff] }
 0x1ce   :  { %v1055_v49 = vmul.f32 %v4094_v35, %v304_v45  ;;  %v629_v46 = vrot.slane %v507_v36, 1  ;;  %v1297_v33 = vmul.f32 %v4110_v63, %v304_v45  ;;  %2106 = vst [vmem:[#allocation8 + $0x88] sm:$0xff] %v2074_v56  ;;  %v872_v8 = vrot.slane %v750_v16, 2  ;;  %v4674_v36 = vld [vmem:[#allocation74_spill] sm:$0xff] }
 0x1cf   :  { %v627_v22 = vrot.slane %v506_v50, 1  ;;  %v870_v62 = vrot.slane %v749_v9, 2  ;;  %v1010_v13 = vadd.f32 %v978_v28, %v4666_v34  ;;  %v1175_v58 = vrot.slane %v1056_v19, 1 }
 0x1d0   :  { %v1173_v20 = vrot.slane %v1055_v49, 1  ;;  %v4668_v43 = vrot.slane %v4667_v55, 1  ;;  %v1415_v54 = vrot.slane %v1297_v33, 2  ;;  %v1417_v2 = vrot.slane %v1298_v60, 2  ;;  %v4675_v49 = vld [vmem:[#allocation40_spill] sm:$0xff]  ;;  %v4679_v55 = vld [vmem:[#allocation43_spill] sm:$0xff] }
 0x1d1   :  { %v630_v38 = vsel %vm565_vm1, %v627_v22, %v629_v46  ;;  %v871_v10 = vsel %vm808_vm2, %v4669_v25, %v870_v62  ;;  %v873_v61 = vsel %vm808_vm2, %v870_v62, %v872_v8  ;;  %v1526_v11 = vmul.f32 %v4120_v44, %v304_v45  ;;  %v4677_v62 = vld [vmem:[#allocation20_spill] sm:$0xff] }
 0x1d2   :  { %v628_v32 = vsel %vm565_vm1, %v4668_v43, %v627_v22  ;;  %v703_v53 = vadd.f32 %v630_v38, %v428_v12  ;;  %v1174_v17 = vsel %vm565_vm1, %v4671_v39, %v1173_v20  ;;  %v1176_v26 = vsel %vm565_vm1, %v1173_v20, %v1175_v58  ;;  %v4676_v22 = vld [vmem:[#allocation42_spill] sm:$0xff]  ;;  %v4685_v39 = vld [vmem:[#allocation63_spill] sm:$0xff] }
 0x1d3   :  { %v702_v14 = vadd.f32 %v628_v32, %v4670_v59  ;;  %v1251_v27 = vadd.f32 %v1174_v17, %v3918_v37  ;;  %v1252_v24 = vadd.f32 %v1176_v26, %v1010_v13  ;;  %v1416_v3 = vsel %vm808_vm2, %v4672_v7, %v1415_v54  ;;  %v4682_v59 = vld [vmem:[#allocation46_spill] sm:$0xff] }
 0x1d4   :  { %v946_v23 = vadd.f32 %v873_v61, %v703_v53  ;;  %v1418_v29 = vsel %vm808_vm2, %v1415_v54, %v1417_v2  ;;  %v1602_v40 = vmul.f32 %v4126_v48, %v304_v45  ;;  %v1603_v56 = vmul.f32 %v4126_v48, %v396_v41  ;;  %v4687_v54 = vld [vmem:[#allocation51_spill] sm:$0xff] }
 0x1d5   :  { %v945_v21 = vadd.f32 %v871_v10, %v702_v14  ;;  %v1493_v12 = vadd.f32 %v1416_v3, %v1251_v27  ;;  %v1494_v50 = vadd.f32 %v1418_v29, %v1252_v24  ;;  %v1558_v9 = vadd.f32 %v1526_v11, %v4674_v36  ;;  %v4681_v10 = vld [vmem:[#allocation45_spill] sm:$0xff]  ;;  %v4683_v14 = vld [vmem:[#allocation56_spill] sm:$0xff] }
 0x1d6   :  { %v1012_v37 = vadd.f32 %v3979_v6, %v946_v23  ;;  %v1718_v16 = vrot.slane %v1602_v40, 1  ;;  %v1720_v28 = vrot.slane %v1603_v56, 1  ;;  %v1844_v4 = vmul.f32 %v4140_v57, %v304_v45  ;;  %v4680_v45 = vld [vmem:[#allocation44_spill] sm:$0xff]  ;;  %v4689_v23 = vld [vmem:[#allocation47_spill] sm:$0xff]  ;;  %v4691_v29 = vld [vmem:[#allocation41_spill] sm:$0xff] }
 0x1d7   :  { %v1011_v18 = vadd.f32 %v4673_v31, %v945_v21  ;;  %v1559_v33 = vadd.f32 %v4677_v62, %v1493_v12  ;;  %v1560_v8 = vadd.f32 %v3989_v42, %v1494_v50  ;;  %v4678_v34 = vrot.slane %v3914_v51, 1  ;;  %v4690_v11 = vld [vmem:[#allocation48_spill] sm:$0xff]  ;;  %v4692_v56 = vld [vmem:[#allocation69_spill] sm:$0xff] }
 0x1d8   :  { %v1254_v46 = vadd.f32 %v4676_v22, %v1012_v37  ;;  %v1721_v13 = vsel %vm565_vm1, %v1718_v16, %v1720_v28  ;;  %v1845_v20 = vmul.f32 %v4140_v57, %v396_v41  ;;  %v1960_v58 = vrot.slane %v1844_v4, 2  ;;  %v4686_v41 = vld [vmem:[#allocation72_spill] sm:$0xff] }
 0x1d9   :  { %v1253_v19 = vadd.f32 %v4675_v49, %v1011_v18  ;;  %v1719_v6 = vsel %vm565_vm1, %v4678_v34, %v1718_v16  ;;  %v1800_v25 = vadd.f32 %v1721_v13, %v1558_v9  ;;  %v1801_v60 = vadd.f32 %v4681_v10, %v1559_v33  ;;  %v4693_v16 = vld [vmem:[#allocation70_spill] sm:$0xff] }
 0x1da   :  { %v1496_v32 = vadd.f32 %v4680_v45, %v1254_v46  ;;  %v1799_v38 = vadd.f32 %v1719_v6, %v3938_v30  ;;  %v1802_v42 = vadd.f32 %v4682_v59, %v1560_v8  ;;  %v4684_v51 = vrot.slane %v4683_v14, 2  ;;  %v4695_v6 = vld [vmem:[#allocation73_spill] sm:$0xff] }
 0x1db   :  { %v1495_v43 = vadd.f32 %v4679_v55, %v1253_v19  ;;  %v1962_v61 = vrot.slane %v1845_v20, 2  ;;  %v4688_v2 = vrot.slane %v4687_v54, 7  ;;  %v2043_v24 = vadd.f32 %v4689_v23, %v1801_v60  ;;  %v4700_v60 = vld [vmem:[#allocation52_spill] sm:$0xff] }
 0x1dc   :  { %v1961_v53 = vsel %vm808_vm2, %v4684_v51, %v1960_v58  ;;  %v1562_v26 = vadd.f32 %v4686_v41, %v1496_v32  ;;  %v2044_v7 = vadd.f32 %v4690_v11, %v1802_v42  ;;  %v400_v3 = vsel %vm266_vm0, %v315_v0, 0.0  ;;  %v4699_v32 = vld [vmem:[#allocation12_spill] sm:$0xff]  ;;  %v4703_v11 = vld [vmem:[#allocation82_spill] sm:$0xff] }
 0x1dd   :  { %v1561_v17 = vadd.f32 %v4685_v39, %v1495_v43  ;;  %v2041_v27 = vadd.f32 %v1961_v53, %v1799_v38  ;;  %v316_v30 = vsel %vm266_vm0, %v4688_v2, %v315_v0  ;;  %v1963_v21 = vsel %vm808_vm2, %v1960_v58, %v1962_v61  ;;  %v4697_v58 = vld [vmem:[#allocation13_spill] sm:$0xff]  ;;  %v4698_v43 = vld [vmem:[#allocation84_spill] sm:$0xff] }
 0x1de   :  { %v1804_v31 = vadd.f32 %v4692_v56, %v1562_v26  ;;  %v2042_v18 = vadd.f32 %v1963_v21, %v1800_v25  ;;  %v2079_v12 = vadd.f32 %v4064_v15, %v2043_v24  ;;  %v2080_v50 = vadd.f32 %v4064_v15, %v2044_v7 }
 0x1df   :  { %v1803_v40 = vadd.f32 %v4691_v29, %v1561_v17  ;;  %v2077_v37 = vadd.f32 %v4064_v15, %v2041_v27  ;;  %v986_v36 = vmul.f32 %v4088_v5, %v316_v30  ;;  %v1067_v9 = vmul.f32 %v4094_v35, %v316_v30  ;;  %v4702_v17 = vld [vmem:[#allocation14_spill] sm:$0xff] }
 0x1e0   :  { %v2046_v4 = vadd.f32 %v4694_v47, %v1804_v31  ;;  %v2078_v0 = vadd.f32 %v4064_v15, %v2042_v18  ;;  %v1068_v49 = vmul.f32 %v4094_v35, %v400_v3  ;;  %2111 = vst [vmem:[#allocation8 + $0xb0] sm:$0xff] %v2079_v12  ;;  %v1309_v46 = vmul.f32 %v4110_v63, %v316_v30  ;;  %v4705_v31 = vld [vmem:[#allocation83_spill] sm:$0xff] }
 0x1e1   :  { %v2045_v28 = vadd.f32 %v4693_v16, %v1803_v40  ;;  %2109 = vst [vmem:[#allocation8 + $0xa0] sm:$0xff] %v2077_v37  ;;  %v1018_v19 = vadd.f32 %v986_v36, %v4181_v1  ;;  %v1193_v22 = vrot.slane %v1067_v9, 1  ;;  %v1310_v62 = vmul.f32 %v4110_v63, %v400_v3 }
 0x1e2   :  { %v2082_v33 = vadd.f32 %v4064_v15, %v2046_v4  ;;  %2110 = vst [vmem:[#allocation8 + $0xa8] sm:$0xff] %v2078_v0  ;;  %v1195_v8 = vrot.slane %v1068_v49, 1  ;;  %v1534_v34 = vmul.f32 %v4120_v44, %v316_v30  ;;  %v4696_v13 = vrot.slane %v4695_v6, 1 }
 0x1e3   :  { %v2081_v5 = vadd.f32 %v4064_v15, %v2045_v28  ;;  %2112 = vst [vmem:[#allocation8 + $0xb8] sm:$0xff] %v2080_v50  ;;  %v1435_v20 = vrot.slane %v1309_v46, 2  ;;  %v1437_v1 = vrot.slane %v1310_v62, 2  ;;  %v1535_v55 = vmul.f32 %v4120_v44, %v4697_v58  ;;  %v4706_v50 = vld [vmem:[#allocation80_spill] sm:$0xff] }
 0x1e4   :  { %v1194_v35 = vsel %vm565_vm1, %v4696_v13, %v1193_v22  ;;  %v1196_v63 = vsel %vm565_vm1, %v1193_v22, %v1195_v8  ;;  %v1536_v38 = vmul.f32 %v4120_v44, %v4699_v32  ;;  %v1566_v25 = vadd.f32 %v1534_v34, %v4185_v52  ;;  %2114 = vst [vmem:[#allocation8 + $0xc8] sm:$0xff] %v2082_v33 }
 0x1e5   :  { %2113 = vst [vmem:[#allocation8 + $0xc0] sm:$0xff] %v2081_v5  ;;  %v1259_v45 = vadd.f32 %v1194_v35, %v4698_v43  ;;  %v1260_v10 = vadd.f32 %v1196_v63, %v1018_v19  ;;  %v4701_v59 = vrot.slane %v4700_v60, 2  ;;  %v1438_v14 = vsel %vm808_vm2, %v1435_v20, %v1437_v1 }
 0x1e6   :  { %v1614_v51 = vmul.f32 %v4126_v48, %v316_v30  ;;  %v1615_v61 = vmul.f32 %v4126_v48, %v400_v3  ;;  %v1616_v39 = vmul.f32 %v4126_v48, %v4697_v58  ;;  %v1617_v44 = vmul.f32 %v4126_v48, %v4699_v32 }
 0x1e7   :  { %v1436_v42 = vsel %vm808_vm2, %v4701_v59, %v1435_v20  ;;  %v1502_v52 = vadd.f32 %v1438_v14, %v1260_v10  ;;  %v1618_v41 = vmul.f32 %v4126_v48, %v4702_v17  ;;  %v1856_v27 = vmul.f32 %v4140_v57, %v316_v30 }
 0x1e8   :  { %v1501_v53 = vadd.f32 %v1436_v42, %v1259_v45  ;;  %v1738_v26 = vrot.slane %v1614_v51, 1  ;;  %v1740_v2 = vrot.slane %v1615_v61, 1  ;;  %v1742_v21 = vrot.slane %v1616_v39, 1 }
 0x1e9   :  { %v1743_v23 = vrot.slane %v1617_v44, 1  ;;  %v1568_v24 = vadd.f32 %v1536_v38, %v1502_v52  ;;  %v4704_v7 = vrot.slane %v4703_v11, 1  ;;  %v1745_v40 = vrot.slane %v1618_v41, 1 }
 0x1ea   :  { %v1567_v54 = vadd.f32 %v1535_v55, %v1501_v53  ;;  %v1857_v56 = vmul.f32 %v4140_v57, %v400_v3  ;;  %v1979_v18 = vrot.slane %v4705_v31, 2  ;;  %v1741_v37 = vsel %vm565_vm1, %v1738_v26, %v1740_v2 }
 0x1eb   :  { %v1739_v29 = vsel %vm565_vm1, %v4704_v7, %v1738_v26  ;;  %v1744_v48 = vsel %vm565_vm1, %v1742_v21, %v1743_v23  ;;  %v1858_v30 = vmul.f32 %v4140_v57, %v4697_v58  ;;  %v1746_v12 = vsel %vm565_vm1, %v1743_v23, %v1745_v40 }
 0x1ec   :  { %v1807_v36 = vadd.f32 %v1739_v29, %v4706_v50  ;;  %v1808_v9 = vadd.f32 %v1741_v37, %v1566_v25  ;;  %v1859_v16 = vmul.f32 %v4140_v57, %v4699_v32  ;;  %v1809_v28 = vadd.f32 %v1744_v48, %v1567_v54 }
 0x1ed   :  { %v1860_v3 = vmul.f32 %v4140_v57, %v4702_v17  ;;  %v1980_v47 = vrot.slane %v1856_v27, 2  ;;  %v1982_v4 = vrot.slane %v1857_v56, 2  ;;  %v1810_v0 = vadd.f32 %v1746_v12, %v1568_v24 }
 0x1ee   :  { %v1984_v49 = vrot.slane %v1858_v30, 2  ;;  %v1985_v19 = vrot.slane %v1859_v16, 2 }
 0x1ef   :  { %v1981_v22 = vsel %vm808_vm2, %v1979_v18, %v1980_v47  ;;  %v1983_v46 = vsel %vm808_vm2, %v1980_v47, %v1982_v4  ;;  %v1987_v62 = vrot.slane %v1860_v3, 2 }
 0x1f0   :  { %v1986_v5 = vsel %vm808_vm2, %v1984_v49, %v1985_v19  ;;  %v2049_v33 = vadd.f32 %v1981_v22, %v1807_v36  ;;  %v2050_v8 = vadd.f32 %v1983_v46, %v1808_v9 }
 0x1f1   :  { %v1988_v34 = vsel %vm808_vm2, %v1985_v19, %v1987_v62  ;;  %v2051_v6 = vadd.f32 %v1986_v5, %v1809_v28 }
 0x1f2   :  { %v2052_v13 = vadd.f32 %v1988_v34, %v1810_v0  ;;  %v2085_v57 = vadd.f32 %v4064_v15, %v2049_v33  ;;  %v2086_v35 = vadd.f32 %v4064_v15, %v2050_v8 }
 0x1f3   :  { %v2087_v20 = vadd.f32 %v4064_v15, %v2051_v6 }
 0x1f4   :  { %v2088_v1 = vadd.f32 %v4064_v15, %v2052_v13  ;;  %2117 = vst [vmem:[#allocation8 + $0xe0] sm:$0xff] %v2085_v57 }
 0x1f5   :  { %2118 = vst [vmem:[#allocation8 + $0xe8] sm:$0xff] %v2086_v35 }
 0x1f6   :  { %2119 = vst [vmem:[#allocation8 + $0xf0] sm:$0xff] %v2087_v20 }
 0x1f7   :  { %2120 = vst [vmem:[#allocation8 + $0xf8] sm:$0xff] %v2088_v1 }
 0x1f8   :  { %2133 = dma.vmem_to_hbm [thread:$0]  %s2126_s16, 4096, %s2128_s19, [#allocation4], %s2331_s26, %s2331_s26, %s2332_s27  }
 0x1f9   :  { %2328 = dma.done.wait [#allocation4], 4096  }
 0x1fa   :  { %2329 = vsyncadd [#allocation4], 4294963200 }
 0x1fb   :  { %2138 = vsyncpa [#allocation3], 1 }
 0x1fc   :  { %2139 = vsyncpa [#allocation6], 1 }
 0x1fd   :  { %2140 = vsyncpa [#allocation4], 1 }

</bundles_post_ra>
